<compile_context>
chip_gen: v6e
topology: v6e:2x2x1
jax: 0.10.0
libtpu: 0.0.40
codegen_flags: <defaults>
</compile_context>

<pallas_src>
import functools

import jax
import jax.numpy as jnp
from jax.experimental import pallas as pl
from jax.experimental.pallas import tpu as pltpu

_LANES = 128


def _pair(v):
    return tuple(int(t) for t in v) if isinstance(v, (tuple, list)) else (int(v), int(v))


# ----------------------------------------------------------------------------
# Pallas kernel: one (batch, row-tile) step of the depthwise 2-D conv (+ bias)
# ----------------------------------------------------------------------------
def _dw_conv2d_kernel(x_ref, w_ref, b_ref, o_ref, *, kh, kw, sh, sw):
    """x_ref: (P, THq_in, Wq, Cp)  phase-decomposed, zero-padded input row slab
       w_ref: (kh*kw, Cp)          per-channel taps (PyTorch (C,1,kh,kw) pre-flattened)
       b_ref: (1, Cp)
       o_ref: (TH, out_w, Cp)
    """
    th, ow, cp = o_ref.shape
    w = w_ref[...].astype(jnp.float32)                              # loaded once
    # Accumulator initialized with broadcast bias (saves one full-tile add pass).
    acc = jnp.broadcast_to(b_ref[...].astype(jnp.float32)[:, None, :], (th, ow, cp))

    loads = {}                                                      # (phase, row-off) -> rows
    for i in range(kh):                                             # static unroll: k*k taps
        for j in range(kw):
            p = (i % sh) * sw + (j % sw)                            # phase id
            r0, c0 = i // sh, j // sw                               # contiguous offsets
            key = (p, r0)
            if key not in loads:
                # One full-width load, reused by all kw column taps of this row.
                loads[key] = x_ref[p, r0:r0 + th, :, :].astype(jnp.float32)
            rows = loads[key]
            patch = rows[:, c0:c0 + ow, :]                          # column shift on the value
            tap = w[i * kw + j:i * kw + j + 1, :]                   # (1, Cp)
            acc = acc + patch * tap[:, None, :]                     # (1, 1, Cp) broadcast
    o_ref[...] = acc.astype(o_ref.dtype)


# ----------------------------------------------------------------------------
# Wrapper (host-side layout plumbing + pallas_call)
# ----------------------------------------------------------------------------
def depthwise_conv2d(x, size, weight, bias=None, *, kernel_size, padding, stride,
                     row_tile=None):
    """Pallas TPU equivalent of Florence-2 DepthWiseConv2d.forward.

    x:      (B, N, C) with N == H*W,  size == (H, W)
    weight: (C, 1, kh, kw)   (PyTorch depthwise Conv2d layout)
    bias:   (C,) or None
    returns (y, (Ho, Wo)) with y: (B, Ho*Wo, C)
    """
    B, N, C = x.shape
    H, W = size
    assert N == H * W, "token count must equal H*W"
    kh, kw = _pair(kernel_size)
    ph, pw = _pair(padding)
    sh, sw = _pair(stride)
    assert weight.shape == (C, 1, kh, kw)

    Hp, Wp = H + 2 * ph, W + 2 * pw
    out_h = (Hp - kh) // sh + 1
    out_w = (Wp - kw) // sw + 1
    assert out_h >= 1 and out_w >= 1

    # ---- channel padding to the 128-lane width (lane-dense, unmasked stores) ----
    Cp = -(-C // _LANES) * _LANES
    if Cp != C:
        x = jnp.pad(x, ((0, 0), (0, 0), (0, Cp - C)))
    w2 = jnp.transpose(weight.reshape(C, kh * kw), (1, 0))          # (kh*kw, C)
    b1 = bias if bias is not None else jnp.zeros((C,), weight.dtype)
    if Cp != C:
        w2 = jnp.pad(w2, ((0, 0), (0, Cp - C)))
        b1 = jnp.pad(b1, (0, Cp - C))
    b2 = b1.reshape(1, Cp)

    # ---- spatial row tiling: generation-safe VMEM footprint + pipelining ----
    halo_h = (kh - 1) // sh
    Wq = out_w + (kw - 1) // sw
    P = sh * sw
    isz = jnp.dtype(x.dtype).itemsize
    bytes_per_out_row_in = P * Wq * Cp * isz
    if row_tile is not None:
        TH = max(1, min(out_h, int(row_tile)))
    else:
        target_in_tile = 3 * 1024 * 1024                            # ~3 MiB input slab / buffer
        TH = int(max(1, min(out_h, target_in_tile // max(1, bytes_per_out_row_in))))
        if TH >= 16:
            TH -= TH % 8
    n_t = (out_h + TH - 1) // TH
    THq_in = TH + halo_h

    # ---- host prep: pad, phase-decompose (stride>1), cut halo'd row slabs so
    #      every in-kernel access is a contiguous lane-dense slice and blocks
    #      never overlap. ----
    # TODO(synk): this is one extra HBM pass over the activations; removing it
    #             entirely needs in-kernel manual DMA with edge masking (or XLA
    #             input fusion into the Pallas DMA), omitted here for robustness.
    Hq_need = n_t * TH + halo_h
    Hp_need = sh * Hq_need
    Wp_ext = sw * Wq
    xi = x.reshape(B, H, W, Cp)
    xp = jnp.pad(xi, ((0, 0),
                      (ph, max(0, Hp_need - H - ph)),
                      (pw, max(0, Wp_ext - W - pw)),
                      (0, 0)))
    xp = xp[:, :Hp_need, :Wp_ext, :]
    xq = (xp.reshape(B, Hq_need, sh, Wq, sw, Cp)
            .transpose(0, 2, 4, 1, 3, 5)
            .reshape(B, P, Hq_need, Wq, Cp))
    if n_t == 1:
        x_slab = xq[:, None]                                        # (B, 1, P, THq_in, Wq, Cp)
    else:
        idx = jnp.arange(n_t)[:, None] * TH + jnp.arange(THq_in)[None, :]
        x_slab = jnp.take(xq, idx, axis=2)                          # (B, P, n_t, THq_in, Wq, Cp)
        x_slab = x_slab.transpose(0, 2, 1, 3, 4, 5)                 # (B, n_t, P, THq_in, Wq, Cp)

    # ---- VMEM budget: 2x double-buffered in/out tiles + f32 accumulator ----
    in_tile = P * THq_in * Wq * Cp * isz
    out_tile = TH * out_w * Cp * isz
    acc_bytes = TH * out_w * Cp * 4
    est = 2 * in_tile + 2 * out_tile + acc_bytes + (kh * kw + 1) * Cp * 4
    vmem_limit = int(min(100 * 1024 * 1024, max(32 * 1024 * 1024, 2 * est)))

    kernel = functools.partial(_dw_conv2d_kernel, kh=kh, kw=kw, sh=sh, sw=sw)
    out = pl.pallas_call(
        kernel,
        grid=(B, n_t),
        in_specs=[
            pl.BlockSpec((None, None, P, THq_in, Wq, Cp),
                         lambda b, t: (b, t, 0, 0, 0, 0)),
            pl.BlockSpec((kh * kw, Cp), lambda b, t: (0, 0)),
            pl.BlockSpec((1, Cp), lambda b, t: (0, 0)),
        ],
        out_specs=pl.BlockSpec((None, TH, out_w, Cp), lambda b, t: (b, t, 0, 0)),
        out_shape=jax.ShapeDtypeStruct((B, out_h, out_w, Cp), x.dtype),
        compiler_params=pltpu.CompilerParams(
            dimension_semantics=("parallel", "parallel"),
            vmem_limit_bytes=vmem_limit),
    )(x_slab, w2, b2)

    if Cp != C:
        out = out[..., :C]
    return out.reshape(B, out_h * out_w, C), (out_h, out_w)


# ----------------------------------------------------------------------------
# Pure-JAX reference (for verification only)
# ----------------------------------------------------------------------------
def _reference_dwconv(x, size, weight, bias, *, kernel_size, padding, stride):
    B, N, C = x.shape
    H, W = size
    kh, kw = _pair(kernel_size)
    ph, pw = _pair(padding)
    sh, sw = _pair(stride)
    xi = x.reshape(B, H, W, C).astype(jnp.float32)
    xp = jnp.pad(xi, ((0, 0), (ph, ph), (pw, pw), (0, 0)))
    Hp, Wp = H + 2 * ph, W + 2 * pw
    oh = (Hp - kh) // sh + 1
    ow = (Wp - kw) // sw + 1
    acc = jnp.zeros((B, oh, ow, C), jnp.float32)
    for i in range(kh):
        for j in range(kw):
            patch = xp[:, i:i + (oh - 1) * sh + 1:sh, j:j + (ow - 1) * sw + 1:sw, :]
            acc = acc + patch * weight[:, 0, i, j][None, None, None, :]
    if bias is not None:
        acc = acc + bias[None, None, None, :]
    return acc.reshape(B, oh * ow, C), (oh, ow)


# ----------------------------------------------------------------------------
if __name__ == "__main__":
    key = jax.random.PRNGKey(0)
    B, H, W = 2, 16, 16
    kh = kw = 3
    tests = [
        dict(C=128, kernel_size=3, padding=1, stride=1, row_tile=None),  # Florence-2 ConvPosEnc path
        dict(C=128, kernel_size=3, padding=1, stride=2, row_tile=None),  # strided / downsampling path
        dict(C=128, kernel_size=3, padding=1, stride=1, row_tile=8),     # multiple row tiles
        dict(C=96,  kernel_size=3, padding=1, stride=1, row_tile=6),     # C%128!=0 + partial last tile
        dict(C=96,  kernel_size=3, padding=1, stride=2, row_tile=4),     # strided + multiple row tiles
    ]
    for t in tests:
        C = t["C"]
        k1, k2, k3, key = jax.random.split(key, 4)
        x = jax.random.normal(k1, (B, H * W, C), dtype=jnp.float32)
        weight = 0.1 * jax.random.normal(k2, (C, 1, kh, kw), dtype=jnp.float32)
        bias = jax.random.normal(k3, (C,), dtype=jnp.float32)
        cfg = dict(kernel_size=t["kernel_size"], padding=t["padding"], stride=t["stride"])

        out, osize = depthwise_conv2d(x, (H, W), weight, bias, row_tile=t["row_tile"], **cfg)
        out = jax.block_until_ready(out)
        ref, rsize = _reference_dwconv(x, (H, W), weight, bias, **cfg)

        assert osize == rsize, (osize, rsize)
        assert out.shape == ref.shape, (out.shape, ref.shape)
        err = float(jnp.max(jnp.abs(out.astype(jnp.float32) - ref)))
        assert err < 1e-3, f"max abs err {err} for {t}"
        assert bool(jnp.all(jnp.isfinite(out)))
    print("KERNEL_OK")
</pallas_src>

<mosaic_0001>
module attributes {stable_mosaic.version = 11 : i64} {
  func.func @_dw_conv2d_kernel(%arg0: i32, %arg1: i32, %arg2: memref<1x1x1x18x18x128xf32, #tpu.memory_space<vmem>>, %arg3: memref<9x128xf32, #tpu.memory_space<vmem>>, %arg4: memref<1x128xf32, #tpu.memory_space<vmem>>, %arg5: memref<1x16x16x128xf32, #tpu.memory_space<vmem>>) attributes {dimension_semantics = [#tpu.dimension_semantics<parallel>, #tpu.dimension_semantics<parallel>], iteration_bounds = array<i64: 2, 1>, scalar_prefetch = 0 : i64, scratch_operands = 0 : i64, tpu.core_type = #tpu.core_type<tc>, window_params = [{transform_indices = @transform_0, window_bounds = array<i64: 1, 1, 1, 18, 18, 128>}, {pipeline_mode = #tpu.pipeline_mode<synchronous>, transform_indices = @transform_1, window_bounds = array<i64: 9, 128>}, {pipeline_mode = #tpu.pipeline_mode<synchronous>, transform_indices = @transform_2, window_bounds = array<i64: 1, 128>}, {transform_indices = @transform_3, window_bounds = array<i64: 1, 16, 16, 128>}]} {
    %c0 = arith.constant 0 : index
    %c0_0 = arith.constant 0 : index
    %0 = vector.load %arg3[%c0, %c0_0] : memref<9x128xf32, #tpu.memory_space<vmem>>, vector<9x128xf32>
    %c0_1 = arith.constant 0 : index
    %c0_2 = arith.constant 0 : index
    %1 = vector.load %arg4[%c0_1, %c0_2] : memref<1x128xf32, #tpu.memory_space<vmem>>, vector<1x128xf32>
    %2 = vector.shape_cast %1 : vector<1x128xf32> to vector<1x1x128xf32>
    %3 = vector.shape_cast %2 : vector<1x1x128xf32> to vector<1x1x128xf32>
    %4 = vector.broadcast %3 : vector<1x1x128xf32> to vector<16x16x128xf32>
    %c0_3 = arith.constant 0 : index
    %c0_4 = arith.constant 0 : index
    %c0_5 = arith.constant 0 : index
    %c0_6 = arith.constant 0 : index
    %c0_7 = arith.constant 0 : index
    %c0_8 = arith.constant 0 : index
    %5 = vector.load %arg2[%c0_3, %c0_4, %c0_5, %c0_6, %c0_7, %c0_8] : memref<1x1x1x18x18x128xf32, #tpu.memory_space<vmem>>, vector<1x1x1x16x18x128xf32>
    %6 = vector.shape_cast %5 : vector<1x1x1x16x18x128xf32> to vector<16x18x128xf32>
    %7 = vector.extract_strided_slice %6 {offsets = [0, 0, 0], sizes = [16, 16, 128], strides = [1, 1, 1]} : vector<16x18x128xf32> to vector<16x16x128xf32>
    %8 = vector.extract_strided_slice %0 {offsets = [0, 0], sizes = [1, 128], strides = [1, 1]} : vector<9x128xf32> to vector<1x128xf32>
    %9 = vector.shape_cast %8 : vector<1x128xf32> to vector<1x1x128xf32>
    %10 = vector.broadcast %9 : vector<1x1x128xf32> to vector<16x16x128xf32>
    %11 = arith.mulf %7, %10 : vector<16x16x128xf32>
    %12 = arith.addf %4, %11 : vector<16x16x128xf32>
    %13 = vector.extract_strided_slice %6 {offsets = [0, 1, 0], sizes = [16, 16, 128], strides = [1, 1, 1]} : vector<16x18x128xf32> to vector<16x16x128xf32>
    %14 = vector.extract_strided_slice %0 {offsets = [1, 0], sizes = [1, 128], strides = [1, 1]} : vector<9x128xf32> to vector<1x128xf32>
    %15 = vector.shape_cast %14 : vector<1x128xf32> to vector<1x1x128xf32>
    %16 = vector.broadcast %15 : vector<1x1x128xf32> to vector<16x16x128xf32>
    %17 = arith.mulf %13, %16 : vector<16x16x128xf32>
    %18 = arith.addf %12, %17 : vector<16x16x128xf32>
    %19 = vector.extract_strided_slice %6 {offsets = [0, 2, 0], sizes = [16, 16, 128], strides = [1, 1, 1]} : vector<16x18x128xf32> to vector<16x16x128xf32>
    %20 = vector.extract_strided_slice %0 {offsets = [2, 0], sizes = [1, 128], strides = [1, 1]} : vector<9x128xf32> to vector<1x128xf32>
    %21 = vector.shape_cast %20 : vector<1x128xf32> to vector<1x1x128xf32>
    %22 = vector.broadcast %21 : vector<1x1x128xf32> to vector<16x16x128xf32>
    %23 = arith.mulf %19, %22 : vector<16x16x128xf32>
    %24 = arith.addf %18, %23 : vector<16x16x128xf32>
    %c0_9 = arith.constant 0 : index
    %c0_10 = arith.constant 0 : index
    %c0_11 = arith.constant 0 : index
    %c1 = arith.constant 1 : index
    %c0_12 = arith.constant 0 : index
    %c0_13 = arith.constant 0 : index
    %25 = vector.load %arg2[%c0_9, %c0_10, %c0_11, %c1, %c0_12, %c0_13] : memref<1x1x1x18x18x128xf32, #tpu.memory_space<vmem>>, vector<1x1x1x16x18x128xf32>
    %26 = vector.shape_cast %25 : vector<1x1x1x16x18x128xf32> to vector<16x18x128xf32>
    %27 = vector.extract_strided_slice %26 {offsets = [0, 0, 0], sizes = [16, 16, 128], strides = [1, 1, 1]} : vector<16x18x128xf32> to vector<16x16x128xf32>
    %28 = vector.extract_strided_slice %0 {offsets = [3, 0], sizes = [1, 128], strides = [1, 1]} : vector<9x128xf32> to vector<1x128xf32>
    %29 = vector.shape_cast %28 : vector<1x128xf32> to vector<1x1x128xf32>
    %30 = vector.broadcast %29 : vector<1x1x128xf32> to vector<16x16x128xf32>
    %31 = arith.mulf %27, %30 : vector<16x16x128xf32>
    %32 = arith.addf %24, %31 : vector<16x16x128xf32>
    %33 = vector.extract_strided_slice %26 {offsets = [0, 1, 0], sizes = [16, 16, 128], strides = [1, 1, 1]} : vector<16x18x128xf32> to vector<16x16x128xf32>
    %34 = vector.extract_strided_slice %0 {offsets = [4, 0], sizes = [1, 128], strides = [1, 1]} : vector<9x128xf32> to vector<1x128xf32>
    %35 = vector.shape_cast %34 : vector<1x128xf32> to vector<1x1x128xf32>
    %36 = vector.broadcast %35 : vector<1x1x128xf32> to vector<16x16x128xf32>
    %37 = arith.mulf %33, %36 : vector<16x16x128xf32>
    %38 = arith.addf %32, %37 : vector<16x16x128xf32>
    %39 = vector.extract_strided_slice %26 {offsets = [0, 2, 0], sizes = [16, 16, 128], strides = [1, 1, 1]} : vector<16x18x128xf32> to vector<16x16x128xf32>
    %40 = vector.extract_strided_slice %0 {offsets = [5, 0], sizes = [1, 128], strides = [1, 1]} : vector<9x128xf32> to vector<1x128xf32>
    %41 = vector.shape_cast %40 : vector<1x128xf32> to vector<1x1x128xf32>
    %42 = vector.broadcast %41 : vector<1x1x128xf32> to vector<16x16x128xf32>
    %43 = arith.mulf %39, %42 : vector<16x16x128xf32>
    %44 = arith.addf %38, %43 : vector<16x16x128xf32>
    %c0_14 = arith.constant 0 : index
    %c0_15 = arith.constant 0 : index
    %c0_16 = arith.constant 0 : index
    %c2 = arith.constant 2 : index
    %c0_17 = arith.constant 0 : index
    %c0_18 = arith.constant 0 : index
    %45 = vector.load %arg2[%c0_14, %c0_15, %c0_16, %c2, %c0_17, %c0_18] : memref<1x1x1x18x18x128xf32, #tpu.memory_space<vmem>>, vector<1x1x1x16x18x128xf32>
    %46 = vector.shape_cast %45 : vector<1x1x1x16x18x128xf32> to vector<16x18x128xf32>
    %47 = vector.extract_strided_slice %46 {offsets = [0, 0, 0], sizes = [16, 16, 128], strides = [1, 1, 1]} : vector<16x18x128xf32> to vector<16x16x128xf32>
    %48 = vector.extract_strided_slice %0 {offsets = [6, 0], sizes = [1, 128], strides = [1, 1]} : vector<9x128xf32> to vector<1x128xf32>
    %49 = vector.shape_cast %48 : vector<1x128xf32> to vector<1x1x128xf32>
    %50 = vector.broadcast %49 : vector<1x1x128xf32> to vector<16x16x128xf32>
    %51 = arith.mulf %47, %50 : vector<16x16x128xf32>
    %52 = arith.addf %44, %51 : vector<16x16x128xf32>
    %53 = vector.extract_strided_slice %46 {offsets = [0, 1, 0], sizes = [16, 16, 128], strides = [1, 1, 1]} : vector<16x18x128xf32> to vector<16x16x128xf32>
    %54 = vector.extract_strided_slice %0 {offsets = [7, 0], sizes = [1, 128], strides = [1, 1]} : vector<9x128xf32> to vector<1x128xf32>
    %55 = vector.shape_cast %54 : vector<1x128xf32> to vector<1x1x128xf32>
    %56 = vector.broadcast %55 : vector<1x1x128xf32> to vector<16x16x128xf32>
    %57 = arith.mulf %53, %56 : vector<16x16x128xf32>
    %58 = arith.addf %52, %57 : vector<16x16x128xf32>
    %59 = vector.extract_strided_slice %46 {offsets = [0, 2, 0], sizes = [16, 16, 128], strides = [1, 1, 1]} : vector<16x18x128xf32> to vector<16x16x128xf32>
    %60 = vector.extract_strided_slice %0 {offsets = [8, 0], sizes = [1, 128], strides = [1, 1]} : vector<9x128xf32> to vector<1x128xf32>
    %61 = vector.shape_cast %60 : vector<1x128xf32> to vector<1x1x128xf32>
    %62 = vector.broadcast %61 : vector<1x1x128xf32> to vector<16x16x128xf32>
    %63 = arith.mulf %59, %62 : vector<16x16x128xf32>
    %64 = arith.addf %58, %63 : vector<16x16x128xf32>
    %c0_19 = arith.constant 0 : index
    %c0_20 = arith.constant 0 : index
    %c0_21 = arith.constant 0 : index
    %c0_22 = arith.constant 0 : index
    %65 = vector.load %arg5[%c0_19, %c0_20, %c0_21, %c0_22] : memref<1x16x16x128xf32, #tpu.memory_space<vmem>>, vector<1x16x16x128xf32>
    %66 = vector.shape_cast %65 : vector<1x16x16x128xf32> to vector<16x16x128xf32>
    %67 = vector.shape_cast %64 : vector<16x16x128xf32> to vector<1x16x16x128xf32>
    tpu.vector_store %arg5[%c0_19, %c0_20, %c0_21, %c0_22], %67 {strides = array<i32>} : memref<1x16x16x128xf32, #tpu.memory_space<vmem>>, vector<1x16x16x128xf32>,
    return
  }
  func.func @transform_0(%arg0: i32, %arg1: i32) -> (i32, i32, i32, i32, i32, i32) {
    %c0_i32 = arith.constant 0 : i32
    %c0_i32_0 = arith.constant 0 : i32
    %c0_i32_1 = arith.constant 0 : i32
    %c0_i32_2 = arith.constant 0 : i32
    %c0_i32_3 = arith.constant 0 : i32
    return %arg0, %arg1, %c0_i32, %c0_i32_0, %c0_i32_1, %c0_i32_2 : i32, i32, i32, i32, i32, i32
  }
  func.func @transform_1(%arg0: i32, %arg1: i32) -> (i32, i32) {
    %c0_i32 = arith.constant 0 : i32
    %c0_i32_0 = arith.constant 0 : i32
    %c0_i32_1 = arith.constant 0 : i32
    return %c0_i32, %c0_i32_0 : i32, i32
  }
  func.func @transform_2(%arg0: i32, %arg1: i32) -> (i32, i32) {
    %c0_i32 = arith.constant 0 : i32
    %c0_i32_0 = arith.constant 0 : i32
    %c0_i32_1 = arith.constant 0 : i32
    return %c0_i32, %c0_i32_0 : i32, i32
  }
  func.func @transform_3(%arg0: i32, %arg1: i32) -> (i32, i32, i32, i32) {
    %c0_i32 = arith.constant 0 : i32
    %c0_i32_0 = arith.constant 0 : i32
    %c0_i32_1 = arith.constant 0 : i32
    return %arg0, %arg1, %c0_i32, %c0_i32_0 : i32, i32, i32, i32
  }
}

</mosaic_0001>

<bundles_post_ra>
// kernel: tpu_custom_call.1
= control target key start
LH: loop header
LB: loop body
LE: loop exit
PB: predicated region body
PF: predicated region fallthrough
CT: control target
= control target key end

     0   :  { %8 = vsyncpa [#allocation3], 0  ;;  %s3796_s0 = inlined_call_operand.vmem [shape: f32[2,1,1,18,18,128], index: 0, kind: input, shape index: {}]   ;;  %s3797_s1 = inlined_call_operand.vmem [shape: f32[9,128], index: 1, kind: input, shape index: {}]   ;;  %s3798_s2 = inlined_call_operand.vmem [shape: f32[1,128], index: 2, kind: input, shape index: {}]   ;;  %s3799_s3 = inlined_call_operand.hbm [shape: f32[2,16,16,128], index: 3, kind: output, shape index: {}]  }
   0x1   :  { %10 = vsyncpa [#allocation3 + $0x1], 0  ;;  %s2428_s12 = smov 0   ;;  %s2430_s13 = smov 0  }
   0x2   :  { %s2432_s14 = smov 0   ;;  %s2434_s15 = smov 0  }
   0x3   :  { %s2436_s16 = smov 0   ;;  %s2438_s17 = smov 0  }
   0x4 LB: > { %s2154_s18 = sadd.s32 4294967295, %s2403_s17   ;;  %s2155_s19 = sadd.s32 4294967294, %s2403_s17   ;;  %s2403_s17 = sphi %s2438_s17, %s16_s17   ;;  %s2399_s16 = sphi %s2436_s16, %s3806_s16   ;;  %s2395_s15 = sphi %s2434_s15, %s3805_s15   ;;  %s2391_s14 = sphi %s2432_s14, %s3804_s14   ;;  %s2387_s13 = sphi %s2430_s13, %s3803_s13   ;;  %s2383_s12 = sphi %s2428_s12, %s3802_s12  }
   0x5   : > { %s28_s20 = sadd.s32 1, %s2399_s16  ;;  %s107_s21 = sadd.s32 1, %s2391_s14 }
   0x6   : > { %p30_p0 = scmp.ge.s32.totalorder %s28_s20, 2  ;;  %p117_p1 = scmp.ne.s32.totalorder %s2391_s14, %s2387_s13 }
   0x7   : > { %p118_p2 = scmp.eq.s32.totalorder %s2154_s18, 1  ;;  %p123_p3 = scmp.ne.s32.totalorder %s2387_s13, %s2383_s12 }
   0x8   : > { %s3808_s20 = smov (%p30_p0, %s28_s20), 0  ;;  %p124_p5 = scmp.eq.s32.totalorder %s2155_s19, 1 }
   0x9   : > { %p2468_p4 = por %p118_p2, %p117_p1  ;;  %s102_s23 = ssub.s32 %s2399_s16, %s3808_s20 }
   0xa   : > { %p2158_p6 = scmp.ge.s32.totalorder %s2403_s17, 1  ;;  %p105_p7 = scmp.eq.s32.totalorder %s102_s23, 0 }
   0xb   : > { %p2475_p8 = por %p124_p5, %p123_p3  ;;  %p160_p9 = scmp.lt.s32.totalorder %s2403_s17, 3 }
   0xc   : > { %s2481_s25 = scalar_select %p105_p7, %s2391_s14, %s107_s21  }
   0xd   : > { %p161_p10 = pnand %p2158_p6, %p160_p9 }
   0xe   : > { %p188_p11 = scmp.lt.s32.totalorder (!%p161_p10), %s2395_s15, 1  ;;  %s185_s10 = sand.u32 (!%p161_p10), 1, %s2387_s13  }
   0xf   : > { %164 = sbr.rel (%p161_p10) target bundleno = 340 (0x154), region = 32  ;;  %s2159_s11 = sshll.u32 (!%p161_p10), %s185_s10, 8 }
  0x10   : > { %s2619_s18 = scalar_lea.vmem (!%p161_p10), [#allocation2], %s2159_s11  ;;  %s2264_s4 = sshll.u32 (!%p161_p10), %s2395_s15, 12 }
  0x11   : > { %s3744_s8 = scalar_lea.hbm (!%p161_p10), %s3799_s3, %s2264_s4  ;;  %s3751_s9 = scalar_lea.sflag (!%p161_p10), [#allocation3], %s185_s10 }
  0x12   : > { %s2405_s11 = smov (!%p161_p10), [#allocation2]  }
  0x13   : > { %s2331_s19 = sshll.u32 (!%p161_p10), %s2405_s11, 4  ;;  %s2332_s19 = int_to_ptr.vmem [resolvable:$false] %s2331_s19 }
  0x14   : > { %v255_v0 = vlaneseq  ;;  %s189_s26 = scalar_select %p188_p11, %s2395_s15, 1  ;;  %v198_v2 = vld [vmem:[%s3797_s1] sm:$0xff]  ;;  %vm423_vm0 = vcmask 1046528   ;;  %vm668_vm1 = vcmask 1045504   ;;  %v2537_v35 = vld [vmem:[%s3797_s1 + $0x8] ss:$0 sm:$0xff] }
  0x15   : > { %v2504_v15 = vld [vmem:[%s3798_s2] ss:$0 sm:$0xff]  ;;  %s2333_s21 = scalar_lea.vmem %s2332_s19, 8192 }
  0x16   : > { %v256_v1 = vshrl.u32 %v255_v0, 7  ;;  %s2265_s29 = smul.u32 432, %s189_s26 }
  0x18   : > { %v257_v3 = vsub.s32 0, %v256_v1  ;;  %v325_v4 = vsub.s32 1, %v256_v1  ;;  %v570_v5 = vsub.s32 2, %v256_v1  ;;  %v864_v6 = vsub.s32 3, %v256_v1  ;;  %s2497_s5 = scalar_lea.vmem %s3796_s0, %s2265_s29 }
  0x19   : > { %v932_v7 = vsub.s32 4, %v256_v1  ;;  %v1176_v8 = vsub.s32 5, %v256_v1  ;;  %v1537_v9 = vsub.s32 7, %v256_v1  ;;  %v1469_v13 = vsub.s32 6, %v256_v1  ;;  %v207_v16 = vld [vmem:[%s2497_s5] sm:$0xff]  ;;  %v208_v17 = vld [vmem:[%s2497_s5 + $0x8] sm:$0xff] }
  0x1a   : > { %v2488_v10 = vrot.slane %v198_v2, %v257_v3  ;;  %v2490_v11 = vrot.slane %v198_v2, %v325_v4  ;;  %v2492_v12 = vrot.slane %v198_v2, %v570_v5  ;;  %v2508_v18 = vrot.slane %v198_v2, %v864_v6  ;;  %v2519_v25 = vld [vmem:[%s2497_s5 + $0x18] sm:$0xff]  ;;  %v2522_v26 = vld [vmem:[%s2497_s5 + $0x20] sm:$0xff]  ;;  %v2544_v40 = vld [vmem:[%s2497_s5 + $0x30] sm:$0xff] }
  0x1b   : > { %v2499_v14 = vrot.slane %v198_v2, %v932_v7  ;;  %v2510_v19 = vrot.slane %v198_v2, %v1176_v8  ;;  %v2512_v20 = vrot.slane %v198_v2, %v1537_v9  ;;  %v2531_v30 = vrot.slane %v198_v2, %v1469_v13  ;;  %v209_v45 = vld [vmem:[%s2497_s5 + $0x10] sm:$0x3]  ;;  %v2555_v49 = vld [vmem:[%s2497_s5 + $0x38] sm:$0xff]  ;;  %v2164_v59 = vld [vmem:[%s2497_s5 + $0x28] sm:$0x3] }
  0x1c   : > { %v259_v21 = vmul.f32 %v2488_v10, %v207_v16  ;;  %v327_v22 = vmul.f32 %v2490_v11, %v207_v16  ;;  %v328_v23 = vmul.f32 %v2490_v11, %v208_v17  ;;  %v572_v24 = vmul.f32 %v2492_v12, %v207_v16  ;;  %v2212_v8 = vld [vmem:[%s2497_s5 + $0x40] sm:$0x3] }
  0x1d   : > { %v573_v27 = vmul.f32 %v2492_v12, %v208_v17  ;;  %v934_v28 = vmul.f32 %v2519_v25, %v2499_v14  ;;  %v2529_v29 = vmul.f32 %v2522_v26, %v2499_v14  ;;  %v866_v37 = vmul.f32 %v2519_v25, %v2508_v18 }
  0x1e   : > { %v291_v31 = vadd.f32 %v2504_v15, %v259_v21  ;;  %v424_v32 = vrot.slane %v327_v22, 1  ;;  %v425_v33 = vrot.slane %v328_v23, 1  ;;  %v669_v34 = vrot.slane %v572_v24, 2 }
  0x1f   : > { %v670_v36 = vrot.slane %v573_v27, 2  ;;  %v1030_v38 = vrot.slane %v934_v28, 1  ;;  %v1178_v39 = vmul.f32 %v2519_v25, %v2510_v19  ;;  %v1031_v42 = vrot.slane %v2529_v29, 1 }
  0x20   : > { %v426_v41 = vsel %vm423_vm0, %v424_v32, %v425_v33  ;;  %v1179_v43 = vmul.f32 %v2522_v26, %v2510_v19  ;;  %v1539_v44 = vmul.f32 %v2544_v40, %v2512_v20  ;;  %v1471_v50 = vmul.f32 %v2544_v40, %v2531_v30 }
  0x21   : > { %v536_v46 = vadd.f32 %v426_v41, %v291_v31  ;;  %v671_v47 = vsel %vm668_vm1, %v669_v34, %v670_v36  ;;  %v1274_v48 = vrot.slane %v1178_v39, 2  ;;  %v1540_v52 = vmul.f32 %v2555_v49, %v2512_v20 }
  0x22   : > { %v1275_v51 = vrot.slane %v1179_v43, 2  ;;  %v1635_v53 = vrot.slane %v1539_v44, 1  ;;  %v1783_v54 = vmul.f32 %v2537_v35, %v2544_v40  ;;  %v2565_v56 = vmul.f32 %v2537_v35, %v2555_v49 }
  0x23   : > { %v781_v55 = vadd.f32 %v671_v47, %v536_v46  ;;  %v260_v57 = vmul.f32 %v2488_v10, %v208_v17  ;;  %v329_v58 = vmul.f32 %v2490_v11, %v209_v45  ;;  %v1032_v60 = vsel %vm423_vm0, %v1030_v38, %v1031_v42 }
  0x24   : > { %v1636_v61 = vrot.slane %v1540_v52, 1  ;;  %v1879_v62 = vrot.slane %v1783_v54, 2  ;;  %v574_v63 = vmul.f32 %v2492_v12, %v209_v45  ;;  %v1880_v1 = vrot.slane %v2565_v56, 2 }
  0x25   : > { %v898_v0 = vadd.f32 %v866_v37, %v781_v55  ;;  %v292_v2 = vadd.f32 %v2504_v15, %v260_v57  ;;  %v427_v3 = vrot.slane %v329_v58, 1  ;;  %v1276_v4 = vsel %vm668_vm1, %v1274_v48, %v1275_v51 }
  0x26   : > { %v1637_v5 = vsel %vm423_vm0, %v1635_v53, %v1636_v61  ;;  %v672_v6 = vrot.slane %v574_v63, 2  ;;  %v936_v7 = vmul.f32 %v2164_v59, %v2499_v14  ;;  %v867_v16 = vmul.f32 %v2522_v26, %v2508_v18 }
  0x27   : > { %v1142_v9 = vadd.f32 %v1032_v60, %v898_v0  ;;  %v428_v13 = vsel %vm423_vm0, %v425_v33, %v427_v3  ;;  %v1180_v17 = vmul.f32 %v2164_v59, %v2510_v19  ;;  %v1881_v21 = vsel %vm668_vm1, %v1879_v62, %v1880_v1 }
  0x28   : > { %v537_v22 = vadd.f32 %v428_v13, %v292_v2  ;;  %v673_v23 = vsel %vm668_vm1, %v670_v36, %v672_v6  ;;  %v1033_v24 = vrot.slane %v936_v7, 1  ;;  %v1541_v29 = vmul.f32 %v2212_v8, %v2512_v20  ;;  %v2628_v7 = vld [vmem:[%s2497_s5 + $0x48] sm:$0xff] }
  0x29   : > { %v1386_v27 = vadd.f32 %v1276_v4, %v1142_v9  ;;  %v1277_v28 = vrot.slane %v1180_v17, 2  ;;  %v1785_v31 = vmul.f32 %v2537_v35, %v2212_v8  ;;  %v1472_v33 = vmul.f32 %v2555_v49, %v2531_v30 }
  0x2a   : > { %v782_v32 = vadd.f32 %v673_v23, %v537_v22  ;;  %v261_v34 = vmul.f32 %v2519_v25, %v2488_v10  ;;  %v330_v37 = vmul.f32 %v2519_v25, %v2490_v11  ;;  %v1034_v38 = vsel %vm423_vm0, %v1031_v42, %v1033_v24  ;;  %v212_v24 = vld [vmem:[%s2497_s5 + $0x28] sm:$0x3] }
  0x2b   : > { %v1503_v36 = vadd.f32 %v1471_v50, %v1386_v27  ;;  %v1278_v39 = vsel %vm668_vm1, %v1275_v51, %v1277_v28  ;;  %v1638_v41 = vrot.slane %v1541_v29, 1  ;;  %v1882_v44 = vrot.slane %v1785_v31, 2 }
  0x2c   : > { %v899_v43 = vadd.f32 %v867_v16, %v782_v32  ;;  %v2599_v45 = vmul.f32 %v2522_v26, %v2490_v11  ;;  %v429_v46 = vrot.slane %v330_v37, 1  ;;  %v293_v52 = vadd.f32 %v2504_v15, %v261_v34  ;;  %v2632_v16 = vld [vmem:[%s2497_s5 + $0x50] sm:$0xff]  ;;  %v2167_v32 = vld [vmem:[%s2497_s5 + $0x40] sm:$0x3] }
  0x2d   : > { %v1747_v47 = vadd.f32 %v1637_v5, %v1503_v36  ;;  %v1639_v48 = vsel %vm423_vm0, %v1636_v61, %v1638_v41  ;;  %v575_v50 = vmul.f32 %v2519_v25, %v2492_v12  ;;  %v576_v51 = vmul.f32 %v2522_v26, %v2492_v12 }
  0x2e   : > { %v1143_v53 = vadd.f32 %v1034_v38, %v899_v43  ;;  %v430_v42 = vrot.slane %v2599_v45, 1  ;;  %v868_v54 = vmul.f32 %v2544_v40, %v2508_v18  ;;  %v937_v57 = vmul.f32 %v2544_v40, %v2499_v14 }
  0x2f   : > { %v1991_v55 = vadd.f32 %v1881_v21, %v1747_v47  ;;  %v674_v56 = vrot.slane %v575_v50, 2  ;;  %v2614_v58 = vmul.f32 %v2555_v49, %v2499_v14  ;;  %v675_v60 = vrot.slane %v576_v51, 2 }
  0x30   : > { %v1387_v25 = vadd.f32 %v1278_v39, %v1143_v53  ;;  %v431_v59 = vsel %vm423_vm0, %v429_v46, %v430_v42  ;;  %v1181_v61 = vmul.f32 %v2544_v40, %v2510_v19  ;;  %v1035_v63 = vrot.slane %v937_v57, 1 }
  0x31   : > { %2023 = vst [vmem:[%s2619_s18] sm:$0xff] %v1991_v55  ;;  %v538_v62 = vadd.f32 %v431_v59, %v293_v52  ;;  %v1036_v0 = vrot.slane %v2614_v58, 1  ;;  %v1182_v2 = vmul.f32 %v2555_v49, %v2510_v19  ;;  %v1883_v4 = vsel %vm668_vm1, %v1880_v1, %v1882_v44  ;;  %v2215_v44 = vld [vmem:[%s2497_s5 + $0x58] sm:$0x3] }
  0x32   : > { %v1504_v3 = vadd.f32 %v1472_v33, %v1387_v25  ;;  %v676_v5 = vsel %vm668_vm1, %v674_v56, %v675_v60  ;;  %v1279_v6 = vrot.slane %v1181_v61, 2  ;;  %v1542_v17 = vmul.f32 %v2628_v7, %v2512_v20 }
  0x33   : > { %v783_v8 = vadd.f32 %v676_v5, %v538_v62  ;;  %v1037_v9 = vsel %vm423_vm0, %v1035_v63, %v1036_v0  ;;  %v1280_v13 = vrot.slane %v1182_v2, 2  ;;  %v1543_v22 = vmul.f32 %v2632_v16, %v2512_v20 }
  0x34   : > { %v1748_v21 = vadd.f32 %v1639_v48, %v1504_v3  ;;  %v1786_v1 = vmul.f32 %v2537_v35, %v2628_v7  ;;  %v2642_v23 = vmul.f32 %v2537_v35, %v2632_v16  ;;  %v1640_v29 = vrot.slane %v1542_v17, 1 }
  0x35   : > { %v900_v27 = vadd.f32 %v868_v54, %v783_v8  ;;  %v1281_v28 = vsel %vm668_vm1, %v1279_v6, %v1280_v13  ;;  %v262_v31 = vmul.f32 %v2522_v26, %v2488_v10  ;;  %v1641_v34 = vrot.slane %v1543_v22, 1 }
  0x36   : > { %v1992_v33 = vadd.f32 %v1883_v4, %v1748_v21  ;;  %v1884_v37 = vrot.slane %v1786_v1, 2  ;;  %v1885_v36 = vrot.slane %v2642_v23, 2  ;;  %v1473_v39 = vmul.f32 %v2628_v7, %v2531_v30 }
  0x37   : > { %v1144_v38 = vadd.f32 %v1037_v9, %v900_v27  ;;  %v332_v41 = vmul.f32 %v2490_v11, %v212_v24  ;;  %v577_v43 = vmul.f32 %v2492_v12, %v212_v24  ;;  %v1642_v45 = vsel %vm423_vm0, %v1640_v29, %v1641_v34 }
  0x38   : > { %2024 = vst [vmem:[%s2619_s18 + $0x8] sm:$0xff] %v1992_v33  ;;  %v294_v26 = vadd.f32 %v2504_v15, %v262_v31  ;;  %v939_v46 = vmul.f32 %v2167_v32, %v2499_v14  ;;  %v1183_v50 = vmul.f32 %v2167_v32, %v2510_v19  ;;  %v1886_v53 = vsel %vm668_vm1, %v1884_v37, %v1885_v36 }
  0x39   : > { %v1388_v47 = vadd.f32 %v1281_v28, %v1144_v38  ;;  %v432_v48 = vrot.slane %v332_v41, 1  ;;  %v677_v52 = vrot.slane %v577_v43, 2  ;;  %v1544_v54 = vmul.f32 %v2215_v44, %v2512_v20 }
  0x3a   : > { %v1038_v51 = vrot.slane %v939_v46, 1  ;;  %v1788_v55 = vmul.f32 %v2537_v35, %v2215_v44  ;;  %v1282_v25 = vrot.slane %v1183_v50, 2  ;;  %v869_v61 = vmul.f32 %v2555_v49, %v2508_v18  ;;  %v2703_v46 = vld [vmem:[%s2497_s5 + $0x68] sm:$0xff] }
  0x3b   : > { %v1505_v56 = vadd.f32 %v1473_v39, %v1388_v47  ;;  %v433_v57 = vsel %vm423_vm0, %v430_v42, %v432_v48  ;;  %v678_v58 = vsel %vm668_vm1, %v675_v60, %v677_v52  ;;  %v1474_v62 = vmul.f32 %v2632_v16, %v2531_v30 }
  0x3c   : > { %v539_v59 = vadd.f32 %v433_v57, %v294_v26  ;;  %v1643_v63 = vrot.slane %v1544_v54, 1  ;;  %v1039_v3 = vsel %vm423_vm0, %v1036_v0, %v1038_v51  ;;  %v263_v4 = vmul.f32 %v2544_v40, %v2488_v10  ;;  %v2700_v26 = vld [vmem:[%s2497_s5 + $0x60] sm:$0xff] }
  0x3d   : > { %v1749_v2 = vadd.f32 %v1642_v45, %v1505_v56  ;;  %v333_v42 = vmul.f32 %v2544_v40, %v2490_v11  ;;  %v1283_v5 = vsel %vm668_vm1, %v1280_v13, %v1282_v25  ;;  %v1887_v6 = vrot.slane %v1788_v55, 2 }
  0x3e   : > { %v784_v60 = vadd.f32 %v678_v58, %v539_v59  ;;  %v334_v8 = vmul.f32 %v2555_v49, %v2490_v11  ;;  %v295_v17 = vadd.f32 %v2504_v15, %v263_v4  ;;  %v578_v0 = vmul.f32 %v2544_v40, %v2492_v12 }
  0x3f   : > { %v1993_v9 = vadd.f32 %v1886_v53, %v1749_v2  ;;  %v434_v21 = vrot.slane %v333_v42, 1  ;;  %v1644_v1 = vsel %vm423_vm0, %v1641_v34, %v1643_v63  ;;  %v579_v24 = vmul.f32 %v2555_v49, %v2492_v12  ;;  %v215_v53 = vld [vmem:[%s2497_s5 + $0x40] sm:$0x3]  ;;  %v2170_v2 = vld [vmem:[%s2497_s5 + $0x58] sm:$0x3] }
  0x40   : > { %v901_v22 = vadd.f32 %v869_v61, %v784_v60  ;;  %v435_v23 = vrot.slane %v334_v8, 1  ;;  %v679_v13 = vrot.slane %v578_v0, 2  ;;  %v940_v27 = vmul.f32 %v2628_v7, %v2499_v14 }
  0x41   : > { %2025 = vst [vmem:[%s2619_s18 + $0x10] sm:$0xff] %v1993_v9  ;;  %v2688_v28 = vmul.f32 %v2632_v16, %v2499_v14  ;;  %v1184_v40 = vmul.f32 %v2628_v7, %v2510_v19  ;;  %v680_v32 = vrot.slane %v579_v24, 2  ;;  %v1185_v33 = vmul.f32 %v2632_v16, %v2510_v19 }
  0x42   : > { %v1145_v29 = vadd.f32 %v1039_v3, %v901_v22  ;;  %v436_v31 = vsel %vm423_vm0, %v434_v21, %v435_v23  ;;  %v870_v37 = vmul.f32 %v2628_v7, %v2508_v18  ;;  %v1040_v38 = vrot.slane %v940_v27, 1 }
  0x43   : > { %v540_v34 = vadd.f32 %v436_v31, %v295_v17  ;;  %v1041_v39 = vrot.slane %v2688_v28, 1  ;;  %v681_v43 = vsel %vm668_vm1, %v679_v13, %v680_v32  ;;  %v1284_v44 = vrot.slane %v1184_v40, 2 }
  0x44   : > { %v1389_v41 = vadd.f32 %v1283_v5, %v1145_v29  ;;  %v1285_v45 = vrot.slane %v1185_v33, 2  ;;  %v1888_v47 = vsel %vm668_vm1, %v1885_v36, %v1887_v6  ;;  %v1545_v52 = vmul.f32 %v2700_v26, %v2512_v20  ;;  %v2218_v5 = vld [vmem:[%s2497_s5 + $0x70] sm:$0x3] }
  0x45   : > { %v785_v48 = vadd.f32 %v681_v43, %v540_v34  ;;  %v1546_v50 = vmul.f32 %v2703_v46, %v2512_v20  ;;  %v1042_v54 = vsel %vm423_vm0, %v1040_v38, %v1041_v39  ;;  %v1789_v55 = vmul.f32 %v2537_v35, %v2700_v26 }
  0x46   : > { %v1506_v51 = vadd.f32 %v1474_v62, %v1389_v41  ;;  %v2716_v56 = vmul.f32 %v2537_v35, %v2703_v46  ;;  %v1645_v57 = vrot.slane %v1545_v52, 1  ;;  %v264_v25 = vmul.f32 %v2555_v49, %v2488_v10 }
  0x47   : > { %v902_v36 = vadd.f32 %v870_v37, %v785_v48  ;;  %v1646_v58 = vrot.slane %v1546_v50, 1  ;;  %v1286_v61 = vsel %vm668_vm1, %v1284_v44, %v1285_v45  ;;  %v1475_v62 = vmul.f32 %v2700_v26, %v2531_v30 }
  0x48   : > { %v1750_v59 = vadd.f32 %v1644_v1, %v1506_v51  ;;  %v335_v63 = vmul.f32 %v2490_v11, %v215_v53  ;;  %v1889_v4 = vrot.slane %v1789_v55, 2  ;;  %v296_v42 = vadd.f32 %v2504_v15, %v264_v25 }
  0x49   : > { %v1146_v3 = vadd.f32 %v1042_v54, %v902_v36  ;;  %v580_v60 = vmul.f32 %v2492_v12, %v215_v53  ;;  %v1647_v49 = vsel %vm423_vm0, %v1645_v57, %v1646_v58  ;;  %v1890_v8 = vrot.slane %v2716_v56, 2 }
  0x4a   : > { %v1994_v6 = vadd.f32 %v1888_v47, %v1750_v59  ;;  %v437_v9 = vrot.slane %v335_v63, 1  ;;  %v942_v0 = vmul.f32 %v2170_v2, %v2499_v14  ;;  %v1186_v22 = vmul.f32 %v2170_v2, %v2510_v19 }
  0x4b   : > { %v1390_v17 = vadd.f32 %v1286_v61, %v1146_v3  ;;  %v682_v21 = vrot.slane %v580_v60, 2  ;;  %v871_v24 = vmul.f32 %v2632_v16, %v2508_v18  ;;  %v1547_v13 = vmul.f32 %v2218_v5, %v2512_v20 }
  0x4c   : > { %2026 = vst [vmem:[%s2619_s18 + $0x18] sm:$0xff] %v1994_v6  ;;  %v438_v1 = vsel %vm423_vm0, %v435_v23, %v437_v9  ;;  %v1791_v27 = vmul.f32 %v2537_v35, %v2218_v5  ;;  %v1043_v31 = vrot.slane %v942_v0, 1  ;;  %v1891_v33 = vsel %vm668_vm1, %v1889_v4, %v1890_v8  ;;  %v2779_v9 = vld [vmem:[%s2497_s5 + $0x80] sm:$0xff] }
  0x4d   : > { %v1507_v28 = vadd.f32 %v1475_v62, %v1390_v17  ;;  %v541_v40 = vadd.f32 %v438_v1, %v296_v42  ;;  %v683_v29 = vsel %vm668_vm1, %v680_v32, %v682_v21  ;;  %v1287_v34 = vrot.slane %v1186_v22, 2  ;;  %v218_v1 = vld [vmem:[%s2497_s5 + $0x58] sm:$0x3] }
  0x4e   : > { %v1648_v37 = vrot.slane %v1547_v13, 1  ;;  %v265_v38 = vmul.f32 %v2628_v7, %v2488_v10  ;;  %v1476_v43 = vmul.f32 %v2703_v46, %v2531_v30  ;;  %v336_v44 = vmul.f32 %v2628_v7, %v2490_v11 }
  0x4f   : > { %v1751_v23 = vadd.f32 %v1647_v49, %v1507_v28  ;;  %v786_v41 = vadd.f32 %v683_v29, %v541_v40  ;;  %v1044_v47 = vsel %vm423_vm0, %v1041_v39, %v1043_v31  ;;  %v1288_v32 = vsel %vm668_vm1, %v1285_v45, %v1287_v34  ;;  %v2776_v49 = vld [vmem:[%s2497_s5 + $0x78] sm:$0xff] }
  0x50   : > { %v1649_v48 = vsel %vm423_vm0, %v1646_v58, %v1648_v37  ;;  %v1892_v52 = vrot.slane %v1791_v27, 2  ;;  %v337_v51 = vmul.f32 %v2632_v16, %v2490_v11  ;;  %v439_v54 = vrot.slane %v336_v44, 1 }
  0x51   : > { %v1995_v50 = vadd.f32 %v1891_v33, %v1751_v23  ;;  %v903_v53 = vadd.f32 %v871_v24, %v786_v41  ;;  %v297_v55 = vadd.f32 %v2504_v15, %v265_v38  ;;  %v581_v56 = vmul.f32 %v2628_v7, %v2492_v12  ;;  %v2173_v23 = vld [vmem:[%s2497_s5 + $0x70] sm:$0x3] }
  0x52   : > { %v582_v36 = vmul.f32 %v2632_v16, %v2492_v12  ;;  %v943_v39 = vmul.f32 %v2700_v26, %v2499_v14  ;;  %v440_v57 = vrot.slane %v337_v51, 1  ;;  %v2761_v58 = vmul.f32 %v2703_v46, %v2499_v14 }
  0x53   : > { %2027 = vst [vmem:[%s2619_s18 + $0x20] sm:$0xff] %v1995_v50  ;;  %v1147_v45 = vadd.f32 %v1044_v47, %v903_v53  ;;  %v1187_v25 = vmul.f32 %v2700_v26, %v2510_v19  ;;  %v684_v59 = vrot.slane %v581_v56, 2  ;;  %v2767_v62 = vmul.f32 %v2703_v46, %v2510_v19 }
  0x54   : > { %v685_v7 = vrot.slane %v582_v36, 2  ;;  %v1045_v61 = vrot.slane %v943_v39, 1  ;;  %v441_v2 = vsel %vm423_vm0, %v439_v54, %v440_v57  ;;  %v872_v3 = vmul.f32 %v2700_v26, %v2508_v18 }
  0x55   : > { %v1391_v63 = vadd.f32 %v1288_v32, %v1147_v45  ;;  %v1046_v4 = vrot.slane %v2761_v58, 1  ;;  %v542_v42 = vadd.f32 %v441_v2, %v297_v55  ;;  %v1289_v5 = vrot.slane %v1187_v25, 2  ;;  %v2221_v32 = vld [vmem:[%s2497_s5 + $0x88] sm:$0x3] }
  0x56   : > { %v686_v60 = vsel %vm668_vm1, %v684_v59, %v685_v7  ;;  %v1290_v6 = vrot.slane %v2767_v62, 2  ;;  %v1893_v21 = vsel %vm668_vm1, %v1890_v8, %v1892_v52  ;;  %v1548_v0 = vmul.f32 %v2776_v49, %v2512_v20 }
  0x57   : > { %v1508_v17 = vadd.f32 %v1476_v43, %v1391_v63  ;;  %v1549_v22 = vmul.f32 %v2779_v9, %v2512_v20  ;;  %v787_v24 = vadd.f32 %v686_v60, %v542_v42  ;;  %v1047_v13 = vsel %vm423_vm0, %v1045_v61, %v1046_v4 }
  0x58   : > { %v1792_v27 = vmul.f32 %v2537_v35, %v2776_v49  ;;  %v2792_v28 = vmul.f32 %v2537_v35, %v2779_v9  ;;  %v1650_v40 = vrot.slane %v1548_v0, 1  ;;  %v266_v31 = vmul.f32 %v2632_v16, %v2488_v10 }
  0x59   : > { %v1752_v8 = vadd.f32 %v1649_v48, %v1508_v17  ;;  %v1651_v29 = vrot.slane %v1549_v22, 1  ;;  %v904_v33 = vadd.f32 %v872_v3, %v787_v24  ;;  %v1291_v34 = vsel %vm668_vm1, %v1289_v5, %v1290_v6 }
  0x5a   : > { %v1477_v37 = vmul.f32 %v2776_v49, %v2531_v30  ;;  %v338_v38 = vmul.f32 %v2490_v11, %v218_v1  ;;  %v1894_v43 = vrot.slane %v1792_v27, 2  ;;  %v298_v44 = vadd.f32 %v2504_v15, %v266_v31 }
  0x5b   : > { %v1996_v41 = vadd.f32 %v1893_v21, %v1752_v8  ;;  %v583_v47 = vmul.f32 %v2492_v12, %v218_v1  ;;  %v1148_v48 = vadd.f32 %v1047_v13, %v904_v33  ;;  %v1652_v52 = vsel %vm423_vm0, %v1650_v40, %v1651_v29 }
  0x5c   : > { %v1895_v16 = vrot.slane %v2792_v28, 2  ;;  %v442_v50 = vrot.slane %v338_v38, 1  ;;  %v873_v51 = vmul.f32 %v2703_v46, %v2508_v18  ;;  %v945_v54 = vmul.f32 %v2173_v23, %v2499_v14 }
  0x5d   : > { %2028 = vst [vmem:[%s2619_s18 + $0x28] sm:$0xff] %v1996_v41  ;;  %v687_v53 = vrot.slane %v583_v47, 2  ;;  %v1189_v55 = vmul.f32 %v2173_v23, %v2510_v19  ;;  %v1392_v56 = vadd.f32 %v1291_v34, %v1148_v48  ;;  %v1550_v39 = vmul.f32 %v2221_v32, %v2512_v20 }
  0x5e   : > { %v443_v36 = vsel %vm423_vm0, %v440_v57, %v442_v50  ;;  %v1794_v45 = vmul.f32 %v2537_v35, %v2221_v32  ;;  %v1048_v59 = vrot.slane %v945_v54, 1  ;;  %v1896_v63 = vsel %vm668_vm1, %v1894_v43, %v1895_v16  ;;  %v2855_v50 = vld [vmem:[%s2497_s5 + $0x98] sm:$0xff] }
  0x5f   : > { %v543_v58 = vadd.f32 %v443_v36, %v298_v44  ;;  %v688_v25 = vsel %vm668_vm1, %v685_v7, %v687_v53  ;;  %v1292_v61 = vrot.slane %v1189_v55, 2  ;;  %v1509_v62 = vadd.f32 %v1477_v37, %v1392_v56  ;;  %v221_v56 = vld [vmem:[%s2497_s5 + $0x70] sm:$0x3] }
  0x60   : > { %v1653_v2 = vrot.slane %v1550_v39, 1  ;;  %v267_v3 = vmul.f32 %v2700_v26, %v2488_v10  ;;  %v1478_v57 = vmul.f32 %v2779_v9, %v2531_v30  ;;  %v1897_v60 = vrot.slane %v1794_v45, 2 }
  0x61   : > { %v788_v42 = vadd.f32 %v688_v25, %v543_v58  ;;  %v339_v5 = vmul.f32 %v2700_v26, %v2490_v11  ;;  %v1753_v17 = vadd.f32 %v1652_v52, %v1509_v62  ;;  %v1049_v7 = vsel %vm423_vm0, %v1046_v4, %v1048_v59  ;;  %v2852_v52 = vld [vmem:[%s2497_s5 + $0x90] sm:$0xff] }
  0x62   : > { %v1293_v21 = vsel %vm668_vm1, %v1290_v6, %v1292_v61  ;;  %v1654_v0 = vsel %vm423_vm0, %v1651_v29, %v1653_v2  ;;  %v340_v1 = vmul.f32 %v2703_v46, %v2490_v11  ;;  %v584_v13 = vmul.f32 %v2700_v26, %v2492_v12 }
  0x63   : > { %v905_v22 = vadd.f32 %v873_v51, %v788_v42  ;;  %v444_v24 = vrot.slane %v339_v5, 1  ;;  %v1997_v27 = vadd.f32 %v1896_v63, %v1753_v17  ;;  %v299_v28 = vadd.f32 %v2504_v15, %v267_v3  ;;  %v2176_v42 = vld [vmem:[%s2497_s5 + $0x88] sm:$0x3] }
  0x64   : > { %v585_v8 = vmul.f32 %v2703_v46, %v2492_v12  ;;  %v946_v4 = vmul.f32 %v2776_v49, %v2499_v14  ;;  %v445_v40 = vrot.slane %v340_v1, 1  ;;  %v689_v29 = vrot.slane %v584_v13, 2 }
  0x65   : > { %v1149_v6 = vadd.f32 %v1049_v7, %v905_v22  ;;  %v2836_v31 = vmul.f32 %v2779_v9, %v2499_v14  ;;  %2029 = vst [vmem:[%s2619_s18 + $0x30] sm:$0xff] %v1997_v27  ;;  %v1190_v34 = vmul.f32 %v2776_v49, %v2510_v19  ;;  %v2843_v37 = vmul.f32 %v2779_v9, %v2510_v19  ;;  %v2224_v7 = vld [vmem:[%s2497_s5 + $0xa0] sm:$0x3] }
  0x66   : > { %v690_v26 = vrot.slane %v585_v8, 2  ;;  %v1050_v33 = vrot.slane %v946_v4, 1  ;;  %v446_v23 = vsel %vm423_vm0, %v444_v24, %v445_v40  ;;  %v874_v41 = vmul.f32 %v2776_v49, %v2508_v18 }
  0x67   : > { %v1393_v38 = vadd.f32 %v1293_v21, %v1149_v6  ;;  %v1051_v43 = vrot.slane %v2836_v31, 1  ;;  %v544_v44 = vadd.f32 %v446_v23, %v299_v28  ;;  %v1294_v32 = vrot.slane %v1190_v34, 2 }
  0x68   : > { %v691_v47 = vsel %vm668_vm1, %v689_v29, %v690_v26  ;;  %v1295_v48 = vrot.slane %v2843_v37, 2  ;;  %v1898_v51 = vsel %vm668_vm1, %v1895_v16, %v1897_v60  ;;  %v1551_v54 = vmul.f32 %v2852_v52, %v2512_v20 }
  0x69   : > { %v1510_v53 = vadd.f32 %v1478_v57, %v1393_v38  ;;  %v1552_v55 = vmul.f32 %v2855_v50, %v2512_v20  ;;  %v789_v36 = vadd.f32 %v691_v47, %v544_v44  ;;  %v1052_v39 = vsel %vm423_vm0, %v1050_v33, %v1051_v43 }
  0x6a   : > { %v1795_v45 = vmul.f32 %v2537_v35, %v2852_v52  ;;  %v2868_v58 = vmul.f32 %v2537_v35, %v2855_v50  ;;  %v1655_v25 = vrot.slane %v1551_v54, 1  ;;  %v268_v61 = vmul.f32 %v2703_v46, %v2488_v10 }
  0x6b   : > { %v1754_v16 = vadd.f32 %v1654_v0, %v1510_v53  ;;  %v1656_v59 = vrot.slane %v1552_v55, 1  ;;  %v906_v62 = vadd.f32 %v874_v41, %v789_v36  ;;  %v1296_v63 = vsel %vm668_vm1, %v1294_v32, %v1295_v48 }
  0x6c   : > { %v1479_v2 = vmul.f32 %v2852_v52, %v2531_v30  ;;  %v341_v3 = vmul.f32 %v2490_v11, %v221_v56  ;;  %v1899_v60 = vrot.slane %v1795_v45, 2  ;;  %v300_v5 = vadd.f32 %v2504_v15, %v268_v61 }
  0x6d   : > { %v1998_v57 = vadd.f32 %v1898_v51, %v1754_v16  ;;  %v586_v17 = vmul.f32 %v2492_v12, %v221_v56  ;;  %v1150_v21 = vadd.f32 %v1052_v39, %v906_v62  ;;  %v1657_v0 = vsel %vm423_vm0, %v1655_v25, %v1656_v59 }
  0x6e   : > { %v1900_v46 = vrot.slane %v2868_v58, 2  ;;  %v447_v22 = vrot.slane %v341_v3, 1  ;;  %v875_v24 = vmul.f32 %v2779_v9, %v2508_v18  ;;  %v948_v13 = vmul.f32 %v2176_v42, %v2499_v14 }
  0x6f   : > { %2030 = vst [vmem:[%s2619_s18 + $0x38] sm:$0xff] %v1998_v57  ;;  %v692_v1 = vrot.slane %v586_v17, 2  ;;  %v1192_v27 = vmul.f32 %v2176_v42, %v2510_v19  ;;  %v1394_v28 = vadd.f32 %v1296_v63, %v1150_v21  ;;  %v1553_v4 = vmul.f32 %v2224_v7, %v2512_v20 }
  0x70   : > { %v448_v8 = vsel %vm423_vm0, %v445_v40, %v447_v22  ;;  %v1797_v6 = vmul.f32 %v2537_v35, %v2224_v7  ;;  %v1053_v33 = vrot.slane %v948_v13, 1  ;;  %v1901_v38 = vsel %vm668_vm1, %v1899_v60, %v1900_v46  ;;  %v2931_v22 = vld [vmem:[%s2497_s5 + $0xb0] sm:$0xff] }
  0x71   : > { %v545_v29 = vadd.f32 %v448_v8, %v300_v5  ;;  %v693_v31 = vsel %vm668_vm1, %v690_v26, %v692_v1  ;;  %v1297_v34 = vrot.slane %v1192_v27, 2  ;;  %v1511_v37 = vadd.f32 %v1479_v2, %v1394_v28  ;;  %v224_v28 = vld [vmem:[%s2497_s5 + $0x88] sm:$0x3] }
  0x72   : > { %v1658_v23 = vrot.slane %v1553_v4, 1  ;;  %v269_v41 = vmul.f32 %v2776_v49, %v2488_v10  ;;  %v1480_v40 = vmul.f32 %v2855_v50, %v2531_v30  ;;  %v1902_v47 = vrot.slane %v1797_v6, 2 }
  0x73   : > { %v790_v44 = vadd.f32 %v693_v31, %v545_v29  ;;  %v342_v32 = vmul.f32 %v2776_v49, %v2490_v11  ;;  %v1755_v53 = vadd.f32 %v1657_v0, %v1511_v37  ;;  %v1054_v26 = vsel %vm423_vm0, %v1051_v43, %v1053_v33  ;;  %v2928_v0 = vld [vmem:[%s2497_s5 + $0xa8] sm:$0xff] }
  0x74   : > { %v1298_v51 = vsel %vm668_vm1, %v1295_v48, %v1297_v34  ;;  %v1659_v54 = vsel %vm423_vm0, %v1656_v59, %v1658_v23  ;;  %v343_v56 = vmul.f32 %v2779_v9, %v2490_v11  ;;  %v587_v39 = vmul.f32 %v2776_v49, %v2492_v12 }
  0x75   : > { %v907_v55 = vadd.f32 %v875_v24, %v790_v44  ;;  %v449_v36 = vrot.slane %v342_v32, 1  ;;  %v1999_v45 = vadd.f32 %v1901_v38, %v1755_v53  ;;  %v301_v58 = vadd.f32 %v2504_v15, %v269_v41  ;;  %v2179_v44 = vld [vmem:[%s2497_s5 + $0xa0] sm:$0x3] }
  0x76   : > { %v588_v16 = vmul.f32 %v2779_v9, %v2492_v12  ;;  %v949_v43 = vmul.f32 %v2852_v52, %v2499_v14  ;;  %v450_v25 = vrot.slane %v343_v56, 1  ;;  %v694_v59 = vrot.slane %v587_v39, 2 }
  0x77   : > { %v1151_v48 = vadd.f32 %v1054_v26, %v907_v55  ;;  %v2912_v61 = vmul.f32 %v2855_v50, %v2499_v14  ;;  %2031 = vst [vmem:[%s2619_s18 + $0x40] sm:$0xff] %v1999_v45  ;;  %v1193_v63 = vmul.f32 %v2852_v52, %v2510_v19  ;;  %v2919_v2 = vmul.f32 %v2855_v50, %v2510_v19  ;;  %v2227_v26 = vld [vmem:[%s2497_s5 + $0xb8] sm:$0x3] }
  0x78   : > { %v695_v49 = vrot.slane %v588_v16, 2  ;;  %v1055_v62 = vrot.slane %v949_v43, 1  ;;  %v451_v42 = vsel %vm423_vm0, %v449_v36, %v450_v25  ;;  %v876_v57 = vmul.f32 %v2852_v52, %v2508_v18 }
  0x79   : > { %v1395_v3 = vadd.f32 %v1298_v51, %v1151_v48  ;;  %v1056_v60 = vrot.slane %v2912_v61, 1  ;;  %v546_v5 = vadd.f32 %v451_v42, %v301_v58  ;;  %v1299_v7 = vrot.slane %v1193_v63, 2 }
  0x7a   : > { %v696_v17 = vsel %vm668_vm1, %v694_v59, %v695_v49  ;;  %v1300_v21 = vrot.slane %v2919_v2, 2  ;;  %v1903_v24 = vsel %vm668_vm1, %v1900_v46, %v1902_v47  ;;  %v1554_v13 = vmul.f32 %v2928_v0, %v2512_v20 }
  0x7b   : > { %v1512_v1 = vadd.f32 %v1480_v40, %v1395_v3  ;;  %v1555_v27 = vmul.f32 %v2931_v22, %v2512_v20  ;;  %v791_v8 = vadd.f32 %v696_v17, %v546_v5  ;;  %v1057_v4 = vsel %vm423_vm0, %v1055_v62, %v1056_v60 }
  0x7c   : > { %v1798_v6 = vmul.f32 %v2537_v35, %v2928_v0  ;;  %v2944_v29 = vmul.f32 %v2537_v35, %v2931_v22  ;;  %v1660_v31 = vrot.slane %v1554_v13, 1  ;;  %v270_v34 = vmul.f32 %v2779_v9, %v2488_v10 }
  0x7d   : > { %v1756_v46 = vadd.f32 %v1659_v54, %v1512_v1  ;;  %v1661_v33 = vrot.slane %v1555_v27, 1  ;;  %v908_v37 = vadd.f32 %v876_v57, %v791_v8  ;;  %v1301_v38 = vsel %vm668_vm1, %v1299_v7, %v1300_v21 }
  0x7e   : > { %v1481_v23 = vmul.f32 %v2928_v0, %v2531_v30  ;;  %v344_v41 = vmul.f32 %v2490_v11, %v224_v28  ;;  %v1904_v47 = vrot.slane %v1798_v6, 2  ;;  %v302_v32 = vadd.f32 %v2504_v15, %v270_v34 }
  0x7f   : > { %v2000_v40 = vadd.f32 %v1903_v24, %v1756_v46  ;;  %v589_v53 = vmul.f32 %v2492_v12, %v224_v28  ;;  %v1152_v51 = vadd.f32 %v1057_v4, %v908_v37  ;;  %v1662_v54 = vsel %vm423_vm0, %v1660_v31, %v1661_v33 }
  0x80   : > { %v1905_v9 = vrot.slane %v2944_v29, 2  ;;  %v452_v55 = vrot.slane %v344_v41, 1  ;;  %v877_v36 = vmul.f32 %v2855_v50, %v2508_v18  ;;  %v951_v39 = vmul.f32 %v2179_v44, %v2499_v14 }
  0x81   : > { %2032 = vst [vmem:[%s2619_s18 + $0x48] sm:$0xff] %v2000_v40  ;;  %v697_v56 = vrot.slane %v589_v53, 2  ;;  %v1195_v45 = vmul.f32 %v2179_v44, %v2510_v19  ;;  %v1396_v58 = vadd.f32 %v1301_v38, %v1152_v51  ;;  %v1556_v43 = vmul.f32 %v2227_v26, %v2512_v20  ;;  %v3004_v51 = vld [vmem:[%s2497_s5 + $0xc0] sm:$0xff] }
  0x82   : > { %v453_v16 = vsel %vm423_vm0, %v450_v25, %v452_v55  ;;  %v1800_v48 = vmul.f32 %v2537_v35, %v2227_v26  ;;  %v1058_v62 = vrot.slane %v951_v39, 1  ;;  %v1906_v3 = vsel %vm668_vm1, %v1904_v47, %v1905_v9 }
  0x83   : > { %v547_v59 = vadd.f32 %v453_v16, %v302_v32  ;;  %v698_v61 = vsel %vm668_vm1, %v695_v49, %v697_v56  ;;  %v1302_v63 = vrot.slane %v1195_v45, 2  ;;  %v1513_v2 = vadd.f32 %v1481_v23, %v1396_v58  ;;  %v227_v45 = vld [vmem:[%s2497_s5 + $0xa0] sm:$0x3] }
  0x84   : > { %v1663_v42 = vrot.slane %v1556_v43, 1  ;;  %v271_v57 = vmul.f32 %v2852_v52, %v2488_v10  ;;  %v1482_v25 = vmul.f32 %v2931_v22, %v2531_v30  ;;  %v1907_v17 = vrot.slane %v1800_v48, 2 }
  0x85   : > { %v792_v5 = vadd.f32 %v698_v61, %v547_v59  ;;  %v345_v7 = vmul.f32 %v2852_v52, %v2490_v11  ;;  %v1757_v1 = vadd.f32 %v1662_v54, %v1513_v2  ;;  %v1059_v49 = vsel %vm423_vm0, %v1056_v60, %v1058_v62  ;;  %v3007_v54 = vld [vmem:[%s2497_s5 + $0xc8] sm:$0xff] }
  0x86   : > { %v1303_v24 = vsel %vm668_vm1, %v1300_v21, %v1302_v63  ;;  %v1664_v13 = vsel %vm423_vm0, %v1661_v33, %v1663_v42  ;;  %v346_v28 = vmul.f32 %v2855_v50, %v2490_v11  ;;  %v590_v4 = vmul.f32 %v2852_v52, %v2492_v12 }
  0x87   : > { %v909_v27 = vadd.f32 %v877_v36, %v792_v5  ;;  %v454_v8 = vrot.slane %v345_v7, 1  ;;  %v2001_v6 = vadd.f32 %v1906_v3, %v1757_v1  ;;  %v303_v29 = vadd.f32 %v2504_v15, %v271_v57  ;;  %v2182_v57 = vld [vmem:[%s2497_s5 + $0xb8] sm:$0x3]  ;;  %v2230_v7 = vld [vmem:[%s2497_s5 + $0xd0] sm:$0x3] }
  0x88   : > { %v591_v46 = vmul.f32 %v2855_v50, %v2492_v12  ;;  %v952_v60 = vmul.f32 %v2928_v0, %v2499_v14  ;;  %v455_v31 = vrot.slane %v346_v28, 1  ;;  %v699_v33 = vrot.slane %v590_v4, 2 }
  0x89   : > { %v1153_v21 = vadd.f32 %v1059_v49, %v909_v27  ;;  %v2988_v34 = vmul.f32 %v2931_v22, %v2499_v14  ;;  %2033 = vst [vmem:[%s2619_s18 + $0x50] sm:$0xff] %v2001_v6  ;;  %v1196_v15 = vmul.f32 %v2928_v0, %v2510_v19  ;;  %v2995_v38 = vmul.f32 %v2931_v22, %v2510_v19 }
  0x8a   : > { %v700_v52 = vrot.slane %v591_v46, 2  ;;  %v1060_v37 = vrot.slane %v952_v60, 1  ;;  %v456_v41 = vsel %vm423_vm0, %v454_v8, %v455_v31  ;;  %v878_v44 = vmul.f32 %v2928_v0, %v2508_v18  ;;  %v3049_v60 = vld [vmem:[%s3797_s1 + $0x8] ss:$0 sm:$0xff] }
  0x8b   : > { %v1397_v23 = vadd.f32 %v1303_v24, %v1153_v21  ;;  %v1061_v40 = vrot.slane %v2988_v34, 1  ;;  %v548_v47 = vadd.f32 %v456_v41, %v303_v29  ;;  %v1304_v53 = vrot.slane %v1196_v15, 2 }
  0x8c   : > { %v701_v32 = vsel %vm668_vm1, %v699_v33, %v700_v52  ;;  %v1305_v26 = vrot.slane %v2995_v38, 2  ;;  %v1908_v56 = vsel %vm668_vm1, %v1905_v9, %v1907_v17  ;;  %v1557_v36 = vmul.f32 %v3004_v51, %v2512_v20 }
  0x8d   : > { %v1514_v55 = vadd.f32 %v1482_v25, %v1397_v23  ;;  %v1558_v39 = vmul.f32 %v3007_v54, %v2512_v20  ;;  %v793_v58 = vadd.f32 %v701_v32, %v548_v47  ;;  %v1062_v16 = vsel %vm423_vm0, %v1060_v37, %v1061_v40 }
  0x8e   : > { %v1801_v43 = vmul.f32 %v2537_v35, %v3004_v51  ;;  %v3020_v48 = vmul.f32 %v2537_v35, %v3007_v54  ;;  %v1665_v59 = vrot.slane %v1557_v36, 1  ;;  %v272_v62 = vmul.f32 %v2855_v50, %v2488_v10  ;;  %v3032_v35 = vld [vmem:[%s3798_s2] ss:$0 sm:$0xff] }
  0x8f   : > { %v1758_v9 = vadd.f32 %v1664_v13, %v1514_v55  ;;  %v1666_v61 = vrot.slane %v1558_v39, 1  ;;  %v910_v63 = vadd.f32 %v878_v44, %v793_v58  ;;  %v1306_v2 = vsel %vm668_vm1, %v1304_v53, %v1305_v26 }
  0x90   : > { %v1483_v3 = vmul.f32 %v3004_v51, %v2531_v30  ;;  %v347_v42 = vmul.f32 %v2490_v11, %v227_v45  ;;  %v1909_v25 = vrot.slane %v1801_v43, 2  ;;  %v304_v17 = vadd.f32 %v3032_v35, %v272_v62 }
  0x91   : > { %v2002_v5 = vadd.f32 %v1908_v56, %v1758_v9  ;;  %v592_v50 = vmul.f32 %v2492_v12, %v227_v45  ;;  %v1154_v1 = vadd.f32 %v1062_v16, %v910_v63  ;;  %v1667_v49 = vsel %vm423_vm0, %v1665_v59, %v1666_v61 }
  0x92   : > { %v1910_v24 = vrot.slane %v3020_v48, 2  ;;  %v457_v13 = vrot.slane %v347_v42, 1  ;;  %v879_v28 = vmul.f32 %v2931_v22, %v2508_v18  ;;  %v954_v8 = vmul.f32 %v2182_v57, %v2499_v14 }
  0x93   : > { %2034 = vst [vmem:[%s2619_s18 + $0x58] sm:$0xff] %v2002_v5  ;;  %v702_v27 = vrot.slane %v592_v50, 2  ;;  %v1198_v4 = vmul.f32 %v2182_v57, %v2510_v19  ;;  %v1398_v6 = vadd.f32 %v1306_v2, %v1154_v1  ;;  %v1559_v46 = vmul.f32 %v2230_v7, %v2512_v20 }
  0x94   : > { %v458_v29 = vsel %vm423_vm0, %v455_v31, %v457_v13  ;;  %v1803_v21 = vmul.f32 %v3049_v60, %v2230_v7  ;;  %v1063_v37 = vrot.slane %v954_v8, 1  ;;  %v1911_v23 = vsel %vm668_vm1, %v1909_v25, %v1910_v24  ;;  %v3093_v13 = vld [vmem:[%s2497_s5 + $0xe0] sm:$0xff] }
  0x95   : > { %v549_v33 = vadd.f32 %v458_v29, %v304_v17  ;;  %v703_v34 = vsel %vm668_vm1, %v700_v52, %v702_v27  ;;  %v1307_v15 = vrot.slane %v1198_v4, 2  ;;  %v1515_v38 = vadd.f32 %v1483_v3, %v1398_v6  ;;  %v230_v6 = vld [vmem:[%s2497_s5 + $0xb8] sm:$0x3] }
  0x96   : > { %v1668_v41 = vrot.slane %v1559_v46, 1  ;;  %v273_v31 = vmul.f32 %v2928_v0, %v2488_v10  ;;  %v1484_v47 = vmul.f32 %v3007_v54, %v2531_v30  ;;  %v1912_v32 = vrot.slane %v1803_v21, 2 }
  0x97   : > { %v794_v44 = vadd.f32 %v703_v34, %v549_v33  ;;  %v348_v53 = vmul.f32 %v2928_v0, %v2490_v11  ;;  %v1759_v55 = vadd.f32 %v1667_v49, %v1515_v38  ;;  %v1064_v52 = vsel %vm423_vm0, %v1061_v40, %v1063_v37  ;;  %v3090_v49 = vld [vmem:[%s2497_s5 + $0xd8] sm:$0xff] }
  0x98   : > { %v1308_v56 = vsel %vm668_vm1, %v1305_v26, %v1307_v15  ;;  %v1669_v36 = vsel %vm423_vm0, %v1666_v61, %v1668_v41  ;;  %v349_v45 = vmul.f32 %v2931_v22, %v2490_v11  ;;  %v593_v16 = vmul.f32 %v2928_v0, %v2492_v12 }
  0x99   : > { %v911_v39 = vadd.f32 %v879_v28, %v794_v44  ;;  %v459_v58 = vrot.slane %v348_v53, 1  ;;  %v2003_v43 = vadd.f32 %v1911_v23, %v1759_v55  ;;  %v305_v48 = vadd.f32 %v3032_v35, %v273_v31  ;;  %v2185_v44 = vld [vmem:[%s2497_s5 + $0xd0] sm:$0x3] }
  0x9a   : > { %v594_v9 = vmul.f32 %v2931_v22, %v2492_v12  ;;  %v955_v40 = vmul.f32 %v3004_v51, %v2499_v14  ;;  %v460_v59 = vrot.slane %v349_v45, 1  ;;  %v704_v61 = vrot.slane %v593_v16, 2 }
  0x9b   : > { %v1155_v26 = vadd.f32 %v1064_v52, %v911_v39  ;;  %v3074_v62 = vmul.f32 %v3007_v54, %v2499_v14  ;;  %2035 = vst [vmem:[%s2619_s18 + $0x60] sm:$0xff] %v2003_v43  ;;  %v1199_v2 = vmul.f32 %v3004_v51, %v2510_v19  ;;  %v3081_v3 = vmul.f32 %v3007_v54, %v2510_v19  ;;  %v2233_v52 = vld [vmem:[%s2497_s5 + $0xe8] sm:$0x3] }
  0x9c   : > { %v705_v0 = vrot.slane %v594_v9, 2  ;;  %v1065_v63 = vrot.slane %v955_v40, 1  ;;  %v461_v57 = vsel %vm423_vm0, %v459_v58, %v460_v59  ;;  %v880_v5 = vmul.f32 %v3004_v51, %v2508_v18 }
  0x9d   : > { %v1399_v42 = vadd.f32 %v1308_v56, %v1155_v26  ;;  %v1066_v25 = vrot.slane %v3074_v62, 1  ;;  %v550_v17 = vadd.f32 %v461_v57, %v305_v48  ;;  %v1309_v7 = vrot.slane %v1199_v2, 2 }
  0x9e   : > { %v706_v50 = vsel %vm668_vm1, %v704_v61, %v705_v0  ;;  %v1310_v1 = vrot.slane %v3081_v3, 2  ;;  %v1913_v28 = vsel %vm668_vm1, %v1910_v24, %v1912_v32  ;;  %v1560_v8 = vmul.f32 %v3090_v49, %v2512_v20 }
  0x9f   : > { %v1516_v27 = vadd.f32 %v1484_v47, %v1399_v42  ;;  %v1561_v4 = vmul.f32 %v3093_v13, %v2512_v20  ;;  %v795_v29 = vadd.f32 %v706_v50, %v550_v17  ;;  %v1067_v46 = vsel %vm423_vm0, %v1065_v63, %v1066_v25 }
  0xa0   : > { %v1804_v21 = vmul.f32 %v3049_v60, %v3090_v49  ;;  %v3106_v33 = vmul.f32 %v3049_v60, %v3093_v13  ;;  %v1670_v34 = vrot.slane %v1560_v8, 1  ;;  %v274_v15 = vmul.f32 %v2931_v22, %v2488_v10 }
  0xa1   : > { %v1760_v24 = vadd.f32 %v1669_v36, %v1516_v27  ;;  %v1671_v37 = vrot.slane %v1561_v4, 1  ;;  %v912_v38 = vadd.f32 %v880_v5, %v795_v29  ;;  %v1311_v23 = vsel %vm668_vm1, %v1309_v7, %v1310_v1 }
  0xa2   : > { %v1485_v41 = vmul.f32 %v3090_v49, %v2531_v30  ;;  %v350_v31 = vmul.f32 %v2490_v11, %v230_v6  ;;  %v1914_v32 = vrot.slane %v1804_v21, 2  ;;  %v306_v53 = vadd.f32 %v3032_v35, %v274_v15 }
  0xa3   : > { %v2004_v47 = vadd.f32 %v1913_v28, %v1760_v24  ;;  %v595_v55 = vmul.f32 %v2492_v12, %v230_v6  ;;  %v1156_v56 = vadd.f32 %v1067_v46, %v912_v38  ;;  %v1672_v36 = vsel %vm423_vm0, %v1670_v34, %v1671_v37 }
  0xa4   : > { %v1915_v22 = vrot.slane %v3106_v33, 2  ;;  %v462_v39 = vrot.slane %v350_v31, 1  ;;  %v881_v58 = vmul.f32 %v3007_v54, %v2508_v18  ;;  %v957_v16 = vmul.f32 %v2185_v44, %v2499_v14 }
  0xa5   : > { %2036 = vst [vmem:[%s2619_s18 + $0x68] sm:$0xff] %v2004_v47  ;;  %v707_v45 = vrot.slane %v595_v55, 2  ;;  %v1201_v43 = vmul.f32 %v2185_v44, %v2510_v19  ;;  %v1400_v48 = vadd.f32 %v1311_v23, %v1156_v56  ;;  %v1562_v40 = vmul.f32 %v2233_v52, %v2512_v20 }
  0xa6   : > { %v463_v9 = vsel %vm423_vm0, %v460_v59, %v462_v39  ;;  %v1806_v26 = vmul.f32 %v3049_v60, %v2233_v52  ;;  %v1068_v63 = vrot.slane %v957_v16, 1  ;;  %v1916_v42 = vsel %vm668_vm1, %v1914_v32, %v1915_v22  ;;  %v3169_v39 = vld [vmem:[%s2497_s5 + $0xf8] sm:$0xff] }
  0xa7   : > { %v551_v61 = vadd.f32 %v463_v9, %v306_v53  ;;  %v708_v62 = vsel %vm668_vm1, %v705_v0, %v707_v45  ;;  %v1312_v2 = vrot.slane %v1201_v43, 2  ;;  %v1517_v3 = vadd.f32 %v1485_v41, %v1400_v48  ;;  %v233_v48 = vld [vmem:[%s2497_s5 + $0xd0] sm:$0x3] }
  0xa8   : > { %v1673_v57 = vrot.slane %v1562_v40, 1  ;;  %v275_v5 = vmul.f32 %v3004_v51, %v2488_v10  ;;  %v1486_v59 = vmul.f32 %v3093_v13, %v2531_v30  ;;  %v1917_v50 = vrot.slane %v1806_v26, 2 }
  0xa9   : > { %v796_v17 = vadd.f32 %v708_v62, %v551_v61  ;;  %v351_v7 = vmul.f32 %v3004_v51, %v2490_v11  ;;  %v1761_v27 = vadd.f32 %v1672_v36, %v1517_v3  ;;  %v1069_v0 = vsel %vm423_vm0, %v1066_v25, %v1068_v63  ;;  %v3166_v36 = vld [vmem:[%s2497_s5 + $0xf0] sm:$0xff] }
  0xaa   : > { %v1313_v28 = vsel %vm668_vm1, %v1310_v1, %v1312_v2  ;;  %v1674_v8 = vsel %vm423_vm0, %v1671_v37, %v1673_v57  ;;  %v352_v6 = vmul.f32 %v3007_v54, %v2490_v11  ;;  %v596_v46 = vmul.f32 %v3004_v51, %v2492_v12 }
  0xab   : > { %v913_v4 = vadd.f32 %v881_v58, %v796_v17  ;;  %v464_v29 = vrot.slane %v351_v7, 1  ;;  %v2005_v21 = vadd.f32 %v1916_v42, %v1761_v27  ;;  %v307_v33 = vadd.f32 %v3032_v35, %v275_v5  ;;  %v2188_v17 = vld [vmem:[%s2497_s5 + $0xe8] sm:$0x3] }
  0xac   : > { %v597_v24 = vmul.f32 %v3007_v54, %v2492_v12  ;;  %v958_v25 = vmul.f32 %v3090_v49, %v2499_v14  ;;  %v465_v34 = vrot.slane %v352_v6, 1  ;;  %v709_v37 = vrot.slane %v596_v46, 2 }
  0xad   : > { %v1157_v1 = vadd.f32 %v1069_v0, %v913_v4  ;;  %v3150_v15 = vmul.f32 %v3093_v13, %v2499_v14  ;;  %2037 = vst [vmem:[%s2619_s18 + $0x70] sm:$0xff] %v2005_v21  ;;  %v1202_v23 = vmul.f32 %v3090_v49, %v2510_v19  ;;  %v3157_v41 = vmul.f32 %v3093_v13, %v2510_v19  ;;  %v2236_v0 = vld [vmem:[%s2497_s5 + $0x100] sm:$0x3] }
  0xae   : > { %v710_v51 = vrot.slane %v597_v24, 2  ;;  %v1070_v38 = vrot.slane %v958_v25, 1  ;;  %v466_v44 = vsel %vm423_vm0, %v464_v29, %v465_v34  ;;  %v882_v47 = vmul.f32 %v3090_v49, %v2508_v18 }
  0xaf   : > { %v1401_v31 = vadd.f32 %v1313_v28, %v1157_v1  ;;  %v1071_v32 = vrot.slane %v3150_v15, 1  ;;  %v552_v53 = vadd.f32 %v466_v44, %v307_v33  ;;  %v1314_v52 = vrot.slane %v1202_v23, 2 }
  0xb0   : > { %v711_v55 = vsel %vm668_vm1, %v709_v37, %v710_v51  ;;  %v1315_v56 = vrot.slane %v3157_v41, 2  ;;  %v1918_v58 = vsel %vm668_vm1, %v1915_v22, %v1917_v50  ;;  %v1563_v16 = vmul.f32 %v3166_v36, %v2512_v20 }
  0xb1   : > { %v1518_v45 = vadd.f32 %v1486_v59, %v1401_v31  ;;  %v1564_v43 = vmul.f32 %v3169_v39, %v2512_v20  ;;  %v797_v9 = vadd.f32 %v711_v55, %v552_v53  ;;  %v1072_v40 = vsel %vm423_vm0, %v1070_v38, %v1071_v32 }
  0xb2   : > { %v1807_v26 = vmul.f32 %v3049_v60, %v3166_v36  ;;  %v3182_v61 = vmul.f32 %v3049_v60, %v3169_v39  ;;  %v1675_v62 = vrot.slane %v1563_v16, 1  ;;  %v276_v2 = vmul.f32 %v3007_v54, %v2488_v10 }
  0xb3   : > { %v1762_v22 = vadd.f32 %v1674_v8, %v1518_v45  ;;  %v1676_v63 = vrot.slane %v1564_v43, 1  ;;  %v914_v3 = vadd.f32 %v882_v47, %v797_v9  ;;  %v1316_v42 = vsel %vm668_vm1, %v1314_v52, %v1315_v56 }
  0xb4   : > { %v1487_v57 = vmul.f32 %v3166_v36, %v2531_v30  ;;  %v353_v5 = vmul.f32 %v2490_v11, %v233_v48  ;;  %v1919_v50 = vrot.slane %v1807_v26, 2  ;;  %v308_v7 = vadd.f32 %v3032_v35, %v276_v2 }
  0xb5   : > { %v2006_v59 = vadd.f32 %v1918_v58, %v1762_v22  ;;  %v598_v27 = vmul.f32 %v2492_v12, %v233_v48  ;;  %v1158_v28 = vadd.f32 %v1072_v40, %v914_v3  ;;  %v1677_v8 = vsel %vm423_vm0, %v1675_v62, %v1676_v63 }
  0xb6   : > { %v1920_v54 = vrot.slane %v3182_v61, 2  ;;  %v467_v4 = vrot.slane %v353_v5, 1  ;;  %v883_v29 = vmul.f32 %v3093_v13, %v2508_v18  ;;  %v960_v46 = vmul.f32 %v2188_v17, %v2499_v14 }
  0xb7   : > { %2038 = vst [vmem:[%s2619_s18 + $0x78] sm:$0xff] %v2006_v59  ;;  %v712_v6 = vrot.slane %v598_v27, 2  ;;  %v1204_v21 = vmul.f32 %v2188_v17, %v2510_v19  ;;  %v1402_v33 = vadd.f32 %v1316_v42, %v1158_v28  ;;  %v1565_v25 = vmul.f32 %v2236_v0, %v2512_v20 }
  0xb8   : > { %v468_v24 = vsel %vm423_vm0, %v465_v34, %v467_v4  ;;  %v1809_v1 = vmul.f32 %v3049_v60, %v2236_v0  ;;  %v1073_v38 = vrot.slane %v960_v46, 1  ;;  %v1921_v31 = vsel %vm668_vm1, %v1919_v50, %v1920_v54  ;;  %v3245_v4 = vld [vmem:[%s2497_s5 + $0x110] sm:$0xff] }
  0xb9   : > { %v553_v37 = vadd.f32 %v468_v24, %v308_v7  ;;  %v713_v15 = vsel %vm668_vm1, %v710_v51, %v712_v6  ;;  %v1317_v23 = vrot.slane %v1204_v21, 2  ;;  %v1519_v41 = vadd.f32 %v1487_v57, %v1402_v33  ;;  %v236_v33 = vld [vmem:[%s2497_s5 + $0xe8] sm:$0x3] }
  0xba   : > { %v1678_v44 = vrot.slane %v1565_v25, 1  ;;  %v277_v47 = vmul.f32 %v3090_v49, %v2488_v10  ;;  %v1488_v34 = vmul.f32 %v3169_v39, %v2531_v30  ;;  %v1922_v55 = vrot.slane %v1809_v1, 2 }
  0xbb   : > { %v798_v53 = vadd.f32 %v713_v15, %v553_v37  ;;  %v354_v52 = vmul.f32 %v3090_v49, %v2490_v11  ;;  %v1763_v45 = vadd.f32 %v1677_v8, %v1519_v41  ;;  %v1074_v51 = vsel %vm423_vm0, %v1071_v32, %v1073_v38  ;;  %v3242_v8 = vld [vmem:[%s2497_s5 + $0x108] sm:$0xff] }
  0xbc   : > { %v1318_v58 = vsel %vm668_vm1, %v1315_v56, %v1317_v23  ;;  %v1679_v16 = vsel %vm423_vm0, %v1676_v63, %v1678_v44  ;;  %v355_v48 = vmul.f32 %v3093_v13, %v2490_v11  ;;  %v599_v40 = vmul.f32 %v3090_v49, %v2492_v12 }
  0xbd   : > { %v915_v43 = vadd.f32 %v883_v29, %v798_v53  ;;  %v469_v9 = vrot.slane %v354_v52, 1  ;;  %v2007_v26 = vadd.f32 %v1921_v31, %v1763_v45  ;;  %v309_v61 = vadd.f32 %v3032_v35, %v277_v47  ;;  %v2191_v53 = vld [vmem:[%s2497_s5 + $0x100] sm:$0x3] }
  0xbe   : > { %v600_v22 = vmul.f32 %v3093_v13, %v2492_v12  ;;  %v961_v32 = vmul.f32 %v3166_v36, %v2499_v14  ;;  %v470_v62 = vrot.slane %v355_v48, 1  ;;  %v714_v63 = vrot.slane %v599_v40, 2 }
  0xbf   : > { %v1159_v56 = vadd.f32 %v1074_v51, %v915_v43  ;;  %v3226_v2 = vmul.f32 %v3169_v39, %v2499_v14  ;;  %2039 = vst [vmem:[%s2619_s18 + $0x80] sm:$0xff] %v2007_v26  ;;  %v1205_v42 = vmul.f32 %v3166_v36, %v2510_v19  ;;  %v3233_v57 = vmul.f32 %v3169_v39, %v2510_v19  ;;  %v2239_v51 = vld [vmem:[%s2497_s5 + $0x118] sm:$0x3] }
  0xc0   : > { %v715_v49 = vrot.slane %v600_v22, 2  ;;  %v1075_v3 = vrot.slane %v961_v32, 1  ;;  %v471_v17 = vsel %vm423_vm0, %v469_v9, %v470_v62  ;;  %v884_v59 = vmul.f32 %v3166_v36, %v2508_v18 }
  0xc1   : > { %v1403_v5 = vadd.f32 %v1318_v58, %v1159_v56  ;;  %v1076_v50 = vrot.slane %v3226_v2, 1  ;;  %v554_v7 = vadd.f32 %v471_v17, %v309_v61  ;;  %v1319_v0 = vrot.slane %v1205_v42, 2 }
  0xc2   : > { %v716_v27 = vsel %vm668_vm1, %v714_v63, %v715_v49  ;;  %v1320_v28 = vrot.slane %v3233_v57, 2  ;;  %v1923_v29 = vsel %vm668_vm1, %v1920_v54, %v1922_v55  ;;  %v1566_v46 = vmul.f32 %v3242_v8, %v2512_v20 }
  0xc3   : > { %v1520_v6 = vadd.f32 %v1488_v34, %v1403_v5  ;;  %v1567_v21 = vmul.f32 %v3245_v4, %v2512_v20  ;;  %v799_v24 = vadd.f32 %v716_v27, %v554_v7  ;;  %v1077_v25 = vsel %vm423_vm0, %v1075_v3, %v1076_v50 }
  0xc4   : > { %v1810_v1 = vmul.f32 %v3049_v60, %v3242_v8  ;;  %v3258_v37 = vmul.f32 %v3049_v60, %v3245_v4  ;;  %v1680_v15 = vrot.slane %v1566_v46, 1  ;;  %v278_v23 = vmul.f32 %v3093_v13, %v2488_v10 }
  0xc5   : > { %v1764_v54 = vadd.f32 %v1679_v16, %v1520_v6  ;;  %v1681_v38 = vrot.slane %v1567_v21, 1  ;;  %v916_v41 = vadd.f32 %v884_v59, %v799_v24  ;;  %v1321_v31 = vsel %vm668_vm1, %v1319_v0, %v1320_v28 }
  0xc6   : > { %v1489_v44 = vmul.f32 %v3242_v8, %v2531_v30  ;;  %v356_v47 = vmul.f32 %v2490_v11, %v236_v33  ;;  %v1924_v55 = vrot.slane %v1810_v1, 2  ;;  %v310_v52 = vadd.f32 %v3032_v35, %v278_v23 }
  0xc7   : > { %v2008_v34 = vadd.f32 %v1923_v29, %v1764_v54  ;;  %v601_v45 = vmul.f32 %v2492_v12, %v236_v33  ;;  %v1160_v58 = vadd.f32 %v1077_v25, %v916_v41  ;;  %v1682_v16 = vsel %vm423_vm0, %v1680_v15, %v1681_v38 }
  0xc8   : > { %v1925_v13 = vrot.slane %v3258_v37, 2  ;;  %v472_v43 = vrot.slane %v356_v47, 1  ;;  %v885_v9 = vmul.f32 %v3169_v39, %v2508_v18  ;;  %v963_v40 = vmul.f32 %v2191_v53, %v2499_v14 }
  0xc9   : > { %2040 = vst [vmem:[%s2619_s18 + $0x88] sm:$0xff] %v2008_v34  ;;  %v717_v48 = vrot.slane %v601_v45, 2  ;;  %v1207_v26 = vmul.f32 %v2191_v53, %v2510_v19  ;;  %v1404_v61 = vadd.f32 %v1321_v31, %v1160_v58  ;;  %v1568_v32 = vmul.f32 %v2239_v51, %v2512_v20 }
  0xca   : > { %v473_v22 = vsel %vm423_vm0, %v470_v62, %v472_v43  ;;  %v1812_v56 = vmul.f32 %v3049_v60, %v2239_v51  ;;  %v1078_v3 = vrot.slane %v963_v40, 1  ;;  %v1926_v5 = vsel %vm668_vm1, %v1924_v55, %v1925_v13  ;;  %v3321_v43 = vld [vmem:[%s2497_s5 + $0x128] sm:$0xff] }
  0xcb   : > { %v555_v63 = vadd.f32 %v473_v22, %v310_v52  ;;  %v718_v2 = vsel %vm668_vm1, %v715_v49, %v717_v48  ;;  %v1322_v42 = vrot.slane %v1207_v26, 2  ;;  %v1521_v57 = vadd.f32 %v1489_v44, %v1404_v61  ;;  %v239_v61 = vld [vmem:[%s2497_s5 + $0x100] sm:$0x3] }
  0xcc   : > { %v1683_v17 = vrot.slane %v1568_v32, 1  ;;  %v279_v59 = vmul.f32 %v3166_v36, %v2488_v10  ;;  %v1490_v62 = vmul.f32 %v3245_v4, %v2531_v30  ;;  %v1927_v27 = vrot.slane %v1812_v56, 2 }
  0xcd   : > { %v800_v7 = vadd.f32 %v718_v2, %v555_v63  ;;  %v357_v0 = vmul.f32 %v3166_v36, %v2490_v11  ;;  %v1765_v6 = vadd.f32 %v1682_v16, %v1521_v57  ;;  %v1079_v49 = vsel %vm423_vm0, %v1076_v50, %v1078_v3  ;;  %v3318_v16 = vld [vmem:[%s2497_s5 + $0x120] sm:$0xff] }
  0xce   : > { %v1323_v29 = vsel %vm668_vm1, %v1320_v28, %v1322_v42  ;;  %v1684_v46 = vsel %vm423_vm0, %v1681_v38, %v1683_v17  ;;  %v358_v33 = vmul.f32 %v3169_v39, %v2490_v11  ;;  %v602_v25 = vmul.f32 %v3166_v36, %v2492_v12 }
  0xcf   : > { %v917_v21 = vadd.f32 %v885_v9, %v800_v7  ;;  %v474_v24 = vrot.slane %v357_v0, 1  ;;  %v2009_v1 = vadd.f32 %v1926_v5, %v1765_v6  ;;  %v311_v37 = vadd.f32 %v3032_v35, %v279_v59  ;;  %v2194_v7 = vld [vmem:[%s2497_s5 + $0x118] sm:$0x3] }
  0xd0   : > { %v603_v54 = vmul.f32 %v3169_v39, %v2492_v12  ;;  %v964_v50 = vmul.f32 %v3242_v8, %v2499_v14  ;;  %v475_v15 = vrot.slane %v358_v33, 1  ;;  %v719_v38 = vrot.slane %v602_v25, 2 }
  0xd1   : > { %v1161_v28 = vadd.f32 %v1079_v49, %v917_v21  ;;  %v3302_v23 = vmul.f32 %v3245_v4, %v2499_v14  ;;  %2041 = vst [vmem:[%s2619_s18 + $0x90] sm:$0xff] %v2009_v1  ;;  %v1208_v31 = vmul.f32 %v3242_v8, %v2510_v19  ;;  %v3309_v44 = vmul.f32 %v3245_v4, %v2510_v19  ;;  %v2242_v49 = vld [vmem:[%s2497_s5 + $0x130] sm:$0x3] }
  0xd2   : > { %v720_v36 = vrot.slane %v603_v54, 2  ;;  %v1080_v41 = vrot.slane %v964_v50, 1  ;;  %v476_v53 = vsel %vm423_vm0, %v474_v24, %v475_v15  ;;  %v886_v34 = vmul.f32 %v3242_v8, %v2508_v18 }
  0xd3   : > { %v1405_v47 = vadd.f32 %v1323_v29, %v1161_v28  ;;  %v1081_v55 = vrot.slane %v3302_v23, 1  ;;  %v556_v52 = vadd.f32 %v476_v53, %v311_v37  ;;  %v1324_v51 = vrot.slane %v1208_v31, 2 }
  0xd4   : > { %v721_v45 = vsel %vm668_vm1, %v719_v38, %v720_v36  ;;  %v1325_v58 = vrot.slane %v3309_v44, 2  ;;  %v1928_v9 = vsel %vm668_vm1, %v1925_v13, %v1927_v27  ;;  %v1569_v40 = vmul.f32 %v3318_v16, %v2512_v20 }
  0xd5   : > { %v1522_v48 = vadd.f32 %v1490_v62, %v1405_v47  ;;  %v1570_v26 = vmul.f32 %v3321_v43, %v2512_v20  ;;  %v801_v22 = vadd.f32 %v721_v45, %v556_v52  ;;  %v1082_v32 = vsel %vm423_vm0, %v1080_v41, %v1081_v55 }
  0xd6   : > { %v1813_v56 = vmul.f32 %v3049_v60, %v3318_v16  ;;  %v3334_v63 = vmul.f32 %v3049_v60, %v3321_v43  ;;  %v1685_v2 = vrot.slane %v1569_v40, 1  ;;  %v280_v42 = vmul.f32 %v3169_v39, %v2488_v10 }
  0xd7   : > { %v1766_v13 = vadd.f32 %v1684_v46, %v1522_v48  ;;  %v1686_v3 = vrot.slane %v1570_v26, 1  ;;  %v918_v57 = vadd.f32 %v886_v34, %v801_v22  ;;  %v1326_v5 = vsel %vm668_vm1, %v1324_v51, %v1325_v58 }
  0xd8   : > { %v1491_v17 = vmul.f32 %v3318_v16, %v2531_v30  ;;  %v359_v59 = vmul.f32 %v2490_v11, %v239_v61  ;;  %v1929_v27 = vrot.slane %v1813_v56, 2  ;;  %v312_v0 = vadd.f32 %v3032_v35, %v280_v42 }
  0xd9   : > { %v2010_v62 = vadd.f32 %v1928_v9, %v1766_v13  ;;  %v604_v6 = vmul.f32 %v2492_v12, %v239_v61  ;;  %v1162_v29 = vadd.f32 %v1082_v32, %v918_v57  ;;  %v1687_v46 = vsel %vm423_vm0, %v1685_v2, %v1686_v3 }
  0xda   : > { %v1930_v39 = vrot.slane %v3334_v63, 2  ;;  %v477_v21 = vrot.slane %v359_v59, 1  ;;  %v887_v24 = vmul.f32 %v3245_v4, %v2508_v18  ;;  %v966_v25 = vmul.f32 %v2194_v7, %v2499_v14 }
  0xdb   : > { %2042 = vst [vmem:[%s2619_s18 + $0x98] sm:$0xff] %v2010_v62  ;;  %v722_v33 = vrot.slane %v604_v6, 2  ;;  %v1210_v1 = vmul.f32 %v2194_v7, %v2510_v19  ;;  %v1406_v37 = vadd.f32 %v1326_v5, %v1162_v29  ;;  %v1571_v50 = vmul.f32 %v2242_v49, %v2512_v20 }
  0xdc   : > { %v478_v54 = vsel %vm423_vm0, %v475_v15, %v477_v21  ;;  %v1815_v28 = vmul.f32 %v3049_v60, %v2242_v49  ;;  %v1083_v41 = vrot.slane %v966_v25, 1  ;;  %v1931_v47 = vsel %vm668_vm1, %v1929_v27, %v1930_v39  ;;  %v3397_v21 = vld [vmem:[%s2497_s5 + $0x140] sm:$0xff] }
  0xdd   : > { %v557_v38 = vadd.f32 %v478_v54, %v312_v0  ;;  %v723_v23 = vsel %vm668_vm1, %v720_v36, %v722_v33  ;;  %v1327_v31 = vrot.slane %v1210_v1, 2  ;;  %v1523_v44 = vadd.f32 %v1491_v17, %v1406_v37  ;;  %v242_v37 = vld [vmem:[%s2497_s5 + $0x118] sm:$0x3] }
  0xde   : > { %v1688_v53 = vrot.slane %v1571_v50, 1  ;;  %v281_v34 = vmul.f32 %v3242_v8, %v2488_v10  ;;  %v1492_v15 = vmul.f32 %v3321_v43, %v2531_v30  ;;  %v1932_v45 = vrot.slane %v1815_v28, 2 }
  0xdf   : > { %v802_v52 = vadd.f32 %v723_v23, %v557_v38  ;;  %v360_v51 = vmul.f32 %v3242_v8, %v2490_v11  ;;  %v1767_v48 = vadd.f32 %v1687_v46, %v1523_v44  ;;  %v1084_v36 = vsel %vm423_vm0, %v1081_v55, %v1083_v41  ;;  %v3394_v46 = vld [vmem:[%s2497_s5 + $0x138] sm:$0xff] }
  0xe0   : > { %v1328_v9 = vsel %vm668_vm1, %v1325_v58, %v1327_v31  ;;  %v1689_v40 = vsel %vm423_vm0, %v1686_v3, %v1688_v53  ;;  %v361_v61 = vmul.f32 %v3245_v4, %v2490_v11  ;;  %v605_v32 = vmul.f32 %v3242_v8, %v2492_v12 }
  0xe1   : > { %v919_v26 = vadd.f32 %v887_v24, %v802_v52  ;;  %v479_v22 = vrot.slane %v360_v51, 1  ;;  %v2011_v56 = vadd.f32 %v1931_v47, %v1767_v48  ;;  %v313_v63 = vadd.f32 %v3032_v35, %v281_v34  ;;  %v2197_v52 = vld [vmem:[%s2497_s5 + $0x130] sm:$0x3] }
  0xe2   : > { %v606_v13 = vmul.f32 %v3245_v4, %v2492_v12  ;;  %v967_v55 = vmul.f32 %v3318_v16, %v2499_v14  ;;  %v480_v2 = vrot.slane %v361_v61, 1  ;;  %v724_v3 = vrot.slane %v605_v32, 2 }
  0xe3   : > { %v1163_v58 = vadd.f32 %v1084_v36, %v919_v26  ;;  %v3378_v42 = vmul.f32 %v3321_v43, %v2499_v14  ;;  %2043 = vst [vmem:[%s2619_s18 + $0xa0] sm:$0xff] %v2011_v56  ;;  %v1211_v5 = vmul.f32 %v3318_v16, %v2510_v19  ;;  %v3385_v17 = vmul.f32 %v3321_v43, %v2510_v19  ;;  %v2245_v36 = vld [vmem:[%s2497_s5 + $0x148] sm:$0x3] }
  0xe4   : > { %v725_v8 = vrot.slane %v606_v13, 2  ;;  %v1085_v57 = vrot.slane %v967_v55, 1  ;;  %v481_v7 = vsel %vm423_vm0, %v479_v22, %v480_v2  ;;  %v888_v62 = vmul.f32 %v3318_v16, %v2508_v18 }
  0xe5   : > { %v1407_v59 = vadd.f32 %v1328_v9, %v1163_v58  ;;  %v1086_v27 = vrot.slane %v3378_v42, 1  ;;  %v558_v0 = vadd.f32 %v481_v7, %v313_v63  ;;  %v1329_v49 = vrot.slane %v1211_v5, 2 }
  0xe6   : > { %v726_v6 = vsel %vm668_vm1, %v724_v3, %v725_v8  ;;  %v1330_v29 = vrot.slane %v3385_v17, 2  ;;  %v1933_v24 = vsel %vm668_vm1, %v1930_v39, %v1932_v45  ;;  %v1572_v25 = vmul.f32 %v3394_v46, %v2512_v20 }
  0xe7   : > { %v1524_v33 = vadd.f32 %v1492_v15, %v1407_v59  ;;  %v1573_v1 = vmul.f32 %v3397_v21, %v2512_v20  ;;  %v803_v54 = vadd.f32 %v726_v6, %v558_v0  ;;  %v1087_v50 = vsel %vm423_vm0, %v1085_v57, %v1086_v27 }
  0xe8   : > { %v1816_v28 = vmul.f32 %v3049_v60, %v3394_v46  ;;  %v3410_v38 = vmul.f32 %v3049_v60, %v3397_v21  ;;  %v1690_v23 = vrot.slane %v1572_v25, 1  ;;  %v282_v31 = vmul.f32 %v3245_v4, %v2488_v10 }
  0xe9   : > { %v1768_v39 = vadd.f32 %v1689_v40, %v1524_v33  ;;  %v1691_v41 = vrot.slane %v1573_v1, 1  ;;  %v920_v44 = vadd.f32 %v888_v62, %v803_v54  ;;  %v1331_v47 = vsel %vm668_vm1, %v1329_v49, %v1330_v29 }
  0xea   : > { %v1493_v53 = vmul.f32 %v3394_v46, %v2531_v30  ;;  %v362_v34 = vmul.f32 %v2490_v11, %v242_v37  ;;  %v1934_v45 = vrot.slane %v1816_v28, 2  ;;  %v314_v51 = vadd.f32 %v3032_v35, %v282_v31 }
  0xeb   : > { %v2012_v15 = vadd.f32 %v1933_v24, %v1768_v39  ;;  %v607_v48 = vmul.f32 %v2492_v12, %v242_v37  ;;  %v1164_v9 = vadd.f32 %v1087_v50, %v920_v44  ;;  %v1692_v40 = vsel %vm423_vm0, %v1690_v23, %v1691_v41 }
  0xec   : > { %v1935_v4 = vrot.slane %v3410_v38, 2  ;;  %v482_v26 = vrot.slane %v362_v34, 1  ;;  %v889_v22 = vmul.f32 %v3321_v43, %v2508_v18  ;;  %v969_v32 = vmul.f32 %v2197_v52, %v2499_v14 }
  0xed   : > { %2044 = vst [vmem:[%s2619_s18 + $0xa8] sm:$0xff] %v2012_v15  ;;  %v727_v61 = vrot.slane %v607_v48, 2  ;;  %v1213_v56 = vmul.f32 %v2197_v52, %v2510_v19  ;;  %v1408_v63 = vadd.f32 %v1331_v47, %v1164_v9  ;;  %v1574_v55 = vmul.f32 %v2245_v36, %v2512_v20 }
  0xee   : > { %v483_v13 = vsel %vm423_vm0, %v480_v2, %v482_v26  ;;  %v1818_v58 = vmul.f32 %v3049_v60, %v2245_v36  ;;  %v1088_v57 = vrot.slane %v969_v32, 1  ;;  %v1936_v59 = vsel %vm668_vm1, %v1934_v45, %v1935_v4  ;;  %v3473_v26 = vld [vmem:[%s2497_s5 + $0x158] sm:$0xff] }
  0xef   : > { %v559_v3 = vadd.f32 %v483_v13, %v314_v51  ;;  %v728_v42 = vsel %vm668_vm1, %v725_v8, %v727_v61  ;;  %v1332_v5 = vrot.slane %v1213_v56, 2  ;;  %v1525_v17 = vadd.f32 %v1493_v53, %v1408_v63  ;;  %v245_v63 = vld [vmem:[%s2497_s5 + $0x130] sm:$0x3] }
  0xf0   : > { %v1693_v7 = vrot.slane %v1574_v55, 1  ;;  %v283_v62 = vmul.f32 %v3318_v16, %v2488_v10  ;;  %v1494_v2 = vmul.f32 %v3397_v21, %v2531_v30  ;;  %v1937_v6 = vrot.slane %v1818_v58, 2 }
  0xf1   : > { %v804_v0 = vadd.f32 %v728_v42, %v559_v3  ;;  %v363_v49 = vmul.f32 %v3318_v16, %v2490_v11  ;;  %v1769_v33 = vadd.f32 %v1692_v40, %v1525_v17  ;;  %v1089_v8 = vsel %vm423_vm0, %v1086_v27, %v1088_v57  ;;  %v3470_v40 = vld [vmem:[%s2497_s5 + $0x150] sm:$0xff] }
  0xf2   : > { %v1333_v24 = vsel %vm668_vm1, %v1330_v29, %v1332_v5  ;;  %v1694_v25 = vsel %vm423_vm0, %v1691_v41, %v1693_v7  ;;  %v364_v37 = vmul.f32 %v3321_v43, %v2490_v11  ;;  %v608_v50 = vmul.f32 %v3318_v16, %v2492_v12 }
  0xf3   : > { %v921_v1 = vadd.f32 %v889_v22, %v804_v0  ;;  %v484_v54 = vrot.slane %v363_v49, 1  ;;  %v2013_v28 = vadd.f32 %v1936_v59, %v1769_v33  ;;  %v315_v38 = vadd.f32 %v3032_v35, %v283_v62  ;;  %v2200_v0 = vld [vmem:[%s2497_s5 + $0x148] sm:$0x3] }
  0xf4   : > { %v609_v39 = vmul.f32 %v3321_v43, %v2492_v12  ;;  %v970_v27 = vmul.f32 %v3394_v46, %v2499_v14  ;;  %v485_v23 = vrot.slane %v364_v37, 1  ;;  %v729_v41 = vrot.slane %v608_v50, 2 }
  0xf5   : > { %v1165_v29 = vadd.f32 %v1089_v8, %v921_v1  ;;  %v3454_v31 = vmul.f32 %v3397_v21, %v2499_v14  ;;  %2045 = vst [vmem:[%s2619_s18 + $0xb0] sm:$0xff] %v2013_v28  ;;  %v1214_v47 = vmul.f32 %v3394_v46, %v2510_v19  ;;  %v3461_v53 = vmul.f32 %v3397_v21, %v2510_v19  ;;  %v2248_v8 = vld [vmem:[%s2497_s5 + $0x160] sm:$0x3] }
  0xf6   : > { %v730_v16 = vrot.slane %v609_v39, 2  ;;  %v1090_v44 = vrot.slane %v970_v27, 1  ;;  %v486_v52 = vsel %vm423_vm0, %v484_v54, %v485_v23  ;;  %v890_v15 = vmul.f32 %v3394_v46, %v2508_v18 }
  0xf7   : > { %v1409_v34 = vadd.f32 %v1333_v24, %v1165_v29  ;;  %v1091_v45 = vrot.slane %v3454_v31, 1  ;;  %v560_v51 = vadd.f32 %v486_v52, %v315_v38  ;;  %v1334_v36 = vrot.slane %v1214_v47, 2 }
  0xf8   : > { %v731_v48 = vsel %vm668_vm1, %v729_v41, %v730_v16  ;;  %v1335_v9 = vrot.slane %v3461_v53, 2  ;;  %v1938_v22 = vsel %vm668_vm1, %v1935_v4, %v1937_v6  ;;  %v1575_v32 = vmul.f32 %v3470_v40, %v2512_v20 }
  0xf9   : > { %v1526_v61 = vadd.f32 %v1494_v2, %v1409_v34  ;;  %v1576_v56 = vmul.f32 %v3473_v26, %v2512_v20  ;;  %v805_v13 = vadd.f32 %v731_v48, %v560_v51  ;;  %v1092_v55 = vsel %vm423_vm0, %v1090_v44, %v1091_v45 }
  0xfa   : > { %v1819_v58 = vmul.f32 %v3049_v60, %v3470_v40  ;;  %v3486_v3 = vmul.f32 %v3049_v60, %v3473_v26  ;;  %v1695_v42 = vrot.slane %v1575_v32, 1  ;;  %v284_v5 = vmul.f32 %v3321_v43, %v2488_v10 }
  0xfb   : > { %v1770_v4 = vadd.f32 %v1694_v25, %v1526_v61  ;;  %v1696_v57 = vrot.slane %v1576_v56, 1  ;;  %v922_v17 = vadd.f32 %v890_v15, %v805_v13  ;;  %v1336_v59 = vsel %vm668_vm1, %v1334_v36, %v1335_v9 }
  0xfc   : > { %v1495_v7 = vmul.f32 %v3470_v40, %v2531_v30  ;;  %v365_v62 = vmul.f32 %v2490_v11, %v245_v63  ;;  %v1939_v6 = vrot.slane %v1819_v58, 2  ;;  %v316_v49 = vadd.f32 %v3032_v35, %v284_v5 }
  0xfd   : > { %v2014_v2 = vadd.f32 %v1938_v22, %v1770_v4  ;;  %v610_v33 = vmul.f32 %v2492_v12, %v245_v63  ;;  %v1166_v24 = vadd.f32 %v1092_v55, %v922_v17  ;;  %v1697_v25 = vsel %vm423_vm0, %v1695_v42, %v1696_v57 }
  0xfe   : > { %v1940_v43 = vrot.slane %v3486_v3, 2  ;;  %v487_v1 = vrot.slane %v365_v62, 1  ;;  %v891_v54 = vmul.f32 %v3397_v21, %v2508_v18  ;;  %v972_v50 = vmul.f32 %v2200_v0, %v2499_v14 }
  0xff   : > { %2046 = vst [vmem:[%s2619_s18 + $0xb8] sm:$0xff] %v2014_v2  ;;  %v732_v37 = vrot.slane %v610_v33, 2  ;;  %v1216_v28 = vmul.f32 %v2200_v0, %v2510_v19  ;;  %v1410_v38 = vadd.f32 %v1336_v59, %v1166_v24  ;;  %v1577_v27 = vmul.f32 %v2248_v8, %v2512_v20  ;;  %v3552_v24 = vld [vmem:[%s2497_s5 + $0x170] sm:$0xff] }
 0x100   : > { %v488_v39 = vsel %vm423_vm0, %v485_v23, %v487_v1  ;;  %v1821_v29 = vmul.f32 %v3049_v60, %v2248_v8  ;;  %v1093_v44 = vrot.slane %v972_v50, 1  ;;  %v1941_v34 = vsel %vm668_vm1, %v1939_v6, %v1940_v43  ;;  %v3549_v8 = vld [vmem:[%s2497_s5 + $0x168] sm:$0xff] }
 0x101   : > { %v561_v41 = vadd.f32 %v488_v39, %v316_v49  ;;  %v733_v31 = vsel %vm668_vm1, %v730_v16, %v732_v37  ;;  %v1337_v47 = vrot.slane %v1216_v28, 2  ;;  %v1527_v53 = vadd.f32 %v1495_v7, %v1410_v38  ;;  %v248_v50 = vld [vmem:[%s2497_s5 + $0x148] sm:$0x3] }
 0x102   : > { %v1698_v52 = vrot.slane %v1577_v27, 1  ;;  %v285_v15 = vmul.f32 %v3394_v46, %v2488_v10  ;;  %v1496_v23 = vmul.f32 %v3473_v26, %v2531_v30  ;;  %v1942_v48 = vrot.slane %v1821_v29, 2  ;;  %v3564_v39 = vld [vmem:[%s3797_s1 + $0x8] ss:$0 sm:$0xff] }
 0x103   : > { %v806_v51 = vadd.f32 %v733_v31, %v561_v41  ;;  %v366_v60 = vmul.f32 %v3394_v46, %v2490_v11  ;;  %v1771_v36 = vadd.f32 %v1697_v25, %v1527_v53  ;;  %v1094_v16 = vsel %vm423_vm0, %v1091_v45, %v1093_v44 }
 0x104   : > { %v1338_v61 = vsel %vm668_vm1, %v1335_v9, %v1337_v47  ;;  %v1699_v22 = vsel %vm423_vm0, %v1696_v57, %v1698_v52  ;;  %v3521_v56 = vmul.f32 %v3397_v21, %v2490_v11  ;;  %v611_v13 = vmul.f32 %v3394_v46, %v2492_v12 }
 0x105   : > { %v923_v32 = vadd.f32 %v891_v54, %v806_v51  ;;  %v489_v63 = vrot.slane %v366_v60, 1  ;;  %v2015_v55 = vadd.f32 %v1941_v34, %v1771_v36  ;;  %v317_v58 = vadd.f32 %v3032_v35, %v285_v15  ;;  %v2203_v15 = vld [vmem:[%s2497_s5 + $0x160] sm:$0x3]  ;;  %v2251_v36 = vld [vmem:[%s2497_s5 + $0x178] sm:$0x3] }
 0x106   : > { %v612_v3 = vmul.f32 %v3397_v21, %v2492_v12  ;;  %v973_v45 = vmul.f32 %v3470_v40, %v2499_v14  ;;  %v490_v4 = vrot.slane %v3521_v56, 1  ;;  %v734_v42 = vrot.slane %v611_v13, 2 }
 0x107   : > { %v1167_v9 = vadd.f32 %v1094_v16, %v923_v32  ;;  %v3533_v57 = vmul.f32 %v3473_v26, %v2499_v14  ;;  %2047 = vst [vmem:[%s2619_s18 + $0xc0] sm:$0xff] %v2015_v55  ;;  %v1217_v35 = vmul.f32 %v3470_v40, %v2510_v19  ;;  %v3540_v17 = vmul.f32 %v3473_v26, %v2510_v19 }
 0x108   : > { %v735_v46 = vrot.slane %v612_v3, 2  ;;  %v1095_v5 = vrot.slane %v973_v45, 1  ;;  %v491_v7 = vsel %vm423_vm0, %v489_v63, %v490_v4  ;;  %v892_v62 = vmul.f32 %v3470_v40, %v2508_v18 }
 0x109   : > { %v1411_v59 = vadd.f32 %v1338_v61, %v1167_v9  ;;  %v1096_v0 = vrot.slane %v3533_v57, 1  ;;  %v562_v2 = vadd.f32 %v491_v7, %v317_v58  ;;  %v1339_v49 = vrot.slane %v1217_v35, 2 }
 0x10a   : > { %v736_v6 = vsel %vm668_vm1, %v734_v42, %v735_v46  ;;  %v1340_v33 = vrot.slane %v3540_v17, 2  ;;  %v1943_v1 = vsel %vm668_vm1, %v1940_v43, %v1942_v48  ;;  %v1578_v37 = vmul.f32 %v3549_v8, %v2512_v20  ;;  %v3582_v48 = vld [vmem:[%s3798_s2] ss:$0 sm:$0xff] }
 0x10b   : > { %v1528_v25 = vadd.f32 %v1496_v23, %v1411_v59  ;;  %v1579_v54 = vmul.f32 %v3552_v24, %v2512_v20  ;;  %v807_v28 = vadd.f32 %v736_v6, %v562_v2  ;;  %v1097_v38 = vsel %vm423_vm0, %v1095_v5, %v1096_v0 }
 0x10c   : > { %v1822_v27 = vmul.f32 %v3564_v39, %v3549_v8  ;;  %v3570_v43 = vmul.f32 %v3564_v39, %v3552_v24  ;;  %v1700_v41 = vrot.slane %v1578_v37, 1  ;;  %v286_v44 = vmul.f32 %v3397_v21, %v2488_v10 }
 0x10d   : > { %v1772_v29 = vadd.f32 %v1699_v22, %v1528_v25  ;;  %v1701_v31 = vrot.slane %v1579_v54, 1  ;;  %v924_v47 = vadd.f32 %v892_v62, %v807_v28  ;;  %v1341_v53 = vsel %vm668_vm1, %v1339_v49, %v1340_v33 }
 0x10e   : > { %v1497_v34 = vmul.f32 %v3549_v8, %v2531_v30  ;;  %v368_v52 = vmul.f32 %v2490_v11, %v248_v50  ;;  %v1944_v23 = vrot.slane %v1822_v27, 2  ;;  %v318_v60 = vadd.f32 %v3582_v48, %v286_v44 }
 0x10f   : > { %v2016_v51 = vadd.f32 %v1943_v1, %v1772_v29  ;;  %v613_v21 = vmul.f32 %v2492_v12, %v248_v50  ;;  %v1168_v16 = vadd.f32 %v1097_v38, %v924_v47  ;;  %v1702_v61 = vsel %vm423_vm0, %v1700_v41, %v1701_v31 }
 0x110   : > { %v1945_v22 = vrot.slane %v3570_v43, 2  ;;  %v492_v32 = vrot.slane %v368_v52, 1  ;;  %v893_v63 = vmul.f32 %v3473_v26, %v2508_v18  ;;  %v975_v13 = vmul.f32 %v2203_v15, %v2499_v14 }
 0x111   : > { %2048 = vst [vmem:[%s2619_s18 + $0xc8] sm:$0xff] %v2016_v51  ;;  %v737_v56 = vrot.slane %v613_v21, 2  ;;  %v1219_v55 = vmul.f32 %v2203_v15, %v2510_v19  ;;  %v1412_v58 = vadd.f32 %v1341_v53, %v1168_v16  ;;  %v1580_v45 = vmul.f32 %v2251_v36, %v2512_v20 }
 0x112   : > { %v493_v3 = vsel %vm423_vm0, %v490_v4, %v492_v32  ;;  %v1824_v9 = vmul.f32 %v3564_v39, %v2251_v36  ;;  %v1098_v5 = vrot.slane %v975_v13, 1  ;;  %v1946_v59 = vsel %vm668_vm1, %v1944_v23, %v1945_v22  ;;  %v3635_v32 = vld [vmem:[%s2497_s5 + $0x188] sm:$0xff] }
 0x113   : > { %v563_v42 = vadd.f32 %v493_v3, %v318_v60  ;;  %v738_v57 = vsel %vm668_vm1, %v735_v46, %v737_v56  ;;  %v1342_v35 = vrot.slane %v1219_v55, 2  ;;  %v1529_v17 = vadd.f32 %v1497_v34, %v1412_v58  ;;  %v251_v58 = vld [vmem:[%s2497_s5 + $0x160] sm:$0x3] }
 0x114   : > { %v1703_v7 = vrot.slane %v1580_v45, 1  ;;  %v287_v62 = vmul.f32 %v3470_v40, %v2488_v10  ;;  %v1498_v4 = vmul.f32 %v3552_v24, %v2531_v30  ;;  %v1947_v6 = vrot.slane %v1824_v9, 2 }
 0x115   : > { %v808_v2 = vadd.f32 %v738_v57, %v563_v42  ;;  %v369_v49 = vmul.f32 %v3470_v40, %v2490_v11  ;;  %v1773_v25 = vadd.f32 %v1702_v61, %v1529_v17  ;;  %v1099_v46 = vsel %vm423_vm0, %v1096_v0, %v1098_v5  ;;  %v3632_v61 = vld [vmem:[%s2497_s5 + $0x180] sm:$0xff] }
 0x116   : > { %v1343_v1 = vsel %vm668_vm1, %v1340_v33, %v1342_v35  ;;  %v1704_v37 = vsel %vm423_vm0, %v1701_v31, %v1703_v7  ;;  %v370_v50 = vmul.f32 %v3473_v26, %v2490_v11  ;;  %v614_v38 = vmul.f32 %v3470_v40, %v2492_v12 }
 0x117   : > { %v925_v54 = vadd.f32 %v893_v63, %v808_v2  ;;  %v494_v28 = vrot.slane %v369_v49, 1  ;;  %v2017_v27 = vadd.f32 %v1946_v59, %v1773_v25  ;;  %v319_v43 = vadd.f32 %v3582_v48, %v287_v62  ;;  %v2206_v2 = vld [vmem:[%s2497_s5 + $0x178] sm:$0x3] }
 0x118   : > { %v615_v29 = vmul.f32 %v3473_v26, %v2492_v12  ;;  %v976_v0 = vmul.f32 %v3549_v8, %v2499_v14  ;;  %v495_v41 = vrot.slane %v370_v50, 1  ;;  %v739_v31 = vrot.slane %v614_v38, 2 }
 0x119   : > { %v1169_v33 = vadd.f32 %v1099_v46, %v925_v54  ;;  %v3619_v44 = vmul.f32 %v3552_v24, %v2499_v14  ;;  %2049 = vst [vmem:[%s2619_s18 + $0xd0] sm:$0xff] %v2017_v27  ;;  %v1220_v53 = vmul.f32 %v3549_v8, %v2510_v19  ;;  %v1221_v34 = vmul.f32 %v3552_v24, %v2510_v19  ;;  %v2254_v46 = vld [vmem:[%s2497_s5 + $0x190] sm:$0x3] }
 0x11a   : > { %v740_v40 = vrot.slane %v615_v29, 2  ;;  %v1100_v47 = vrot.slane %v976_v0, 1  ;;  %v496_v15 = vsel %vm423_vm0, %v494_v28, %v495_v41  ;;  %v894_v51 = vmul.f32 %v3549_v8, %v2508_v18 }
 0x11b   : > { %v1413_v52 = vadd.f32 %v1343_v1, %v1169_v33  ;;  %v1101_v23 = vrot.slane %v3619_v44, 1  ;;  %v564_v60 = vadd.f32 %v496_v15, %v319_v43  ;;  %v1344_v36 = vrot.slane %v1220_v53, 2 }
 0x11c   : > { %v741_v21 = vsel %vm668_vm1, %v739_v31, %v740_v40  ;;  %v1345_v16 = vrot.slane %v1221_v34, 2  ;;  %v1948_v63 = vsel %vm668_vm1, %v1945_v22, %v1947_v6  ;;  %v1581_v13 = vmul.f32 %v3632_v61, %v2512_v20 }
 0x11d   : > { %v1530_v56 = vadd.f32 %v1498_v4, %v1413_v52  ;;  %v3642_v55 = vmul.f32 %v3635_v32, %v2512_v20  ;;  %v809_v3 = vadd.f32 %v741_v21, %v564_v60  ;;  %v1102_v45 = vsel %vm423_vm0, %v1100_v47, %v1101_v23 }
 0x11e   : > { %v1825_v9 = vmul.f32 %v3564_v39, %v3632_v61  ;;  %v3650_v42 = vmul.f32 %v3564_v39, %v3635_v32  ;;  %v1705_v57 = vrot.slane %v1581_v13, 1  ;;  %v288_v35 = vmul.f32 %v3473_v26, %v2488_v10 }
 0x11f   : > { %v1774_v22 = vadd.f32 %v1704_v37, %v1530_v56  ;;  %v1706_v5 = vrot.slane %v3642_v55, 1  ;;  %v926_v17 = vadd.f32 %v894_v51, %v809_v3  ;;  %v1346_v59 = vsel %vm668_vm1, %v1344_v36, %v1345_v16 }
 0x120   : > { %v1499_v7 = vmul.f32 %v3632_v61, %v2531_v30  ;;  %v371_v62 = vmul.f32 %v2490_v11, %v251_v58  ;;  %v1949_v6 = vrot.slane %v1825_v9, 2  ;;  %v320_v49 = vadd.f32 %v3582_v48, %v288_v35 }
 0x121   : > { %v2018_v4 = vadd.f32 %v1948_v63, %v1774_v22  ;;  %v616_v25 = vmul.f32 %v2492_v12, %v251_v58  ;;  %v1170_v1 = vadd.f32 %v1102_v45, %v926_v17  ;;  %v1707_v37 = vsel %vm423_vm0, %v1705_v57, %v1706_v5 }
 0x122   : > { %v1950_v26 = vrot.slane %v3650_v42, 2  ;;  %v497_v54 = vrot.slane %v371_v62, 1  ;;  %v895_v28 = vmul.f32 %v3552_v24, %v2508_v18  ;;  %v978_v38 = vmul.f32 %v2206_v2, %v2499_v14  ;;  %v2255_v62 = vld [vmem:[%s2497_s5 + $0x198] sm:$0xff] }
 0x123   : > { %2050 = vst [vmem:[%s2619_s18 + $0xd8] sm:$0xff] %v2018_v4  ;;  %v742_v50 = vrot.slane %v616_v25, 2  ;;  %v1222_v27 = vmul.f32 %v2206_v2, %v2510_v19  ;;  %v1414_v43 = vadd.f32 %v1346_v59, %v1170_v1  ;;  %v1583_v0 = vmul.f32 %v2254_v46, %v2512_v20  ;;  %v2256_v2 = vld [vmem:[%s2497_s5 + $0x1a0] sm:$0xff] }
 0x124   : > { %v498_v29 = vsel %vm423_vm0, %v495_v41, %v497_v54  ;;  %v1827_v33 = vmul.f32 %v3564_v39, %v2254_v46  ;;  %v1103_v47 = vrot.slane %v978_v38, 1  ;;  %v1951_v52 = vsel %vm668_vm1, %v1949_v6, %v1950_v26 }
 0x125   : > { %v565_v31 = vadd.f32 %v498_v29, %v320_v49  ;;  %v743_v44 = vsel %vm668_vm1, %v740_v40, %v742_v50  ;;  %v1347_v53 = vrot.slane %v1222_v27, 2  ;;  %v1531_v34 = vadd.f32 %v1499_v7, %v1414_v43  ;;  %v254_v27 = vld [vmem:[%s2497_s5 + $0x178] sm:$0x3] }
 0x126   : > { %v289_v15 = vmul.f32 %v3549_v8, %v2488_v10  ;;  %v1500_v60 = vmul.f32 %v3635_v32, %v2531_v30  ;;  %v1708_v41 = vrot.slane %v1583_v0, 1  ;;  %v372_v21 = vmul.f32 %v3549_v8, %v2490_v11 }
 0x127   : > { %v810_v51 = vadd.f32 %v743_v44, %v565_v31  ;;  %v1775_v36 = vadd.f32 %v1707_v37, %v1531_v34  ;;  %v1104_v40 = vsel %vm423_vm0, %v1101_v23, %v1103_v47  ;;  %v1348_v56 = vsel %vm668_vm1, %v1345_v16, %v1347_v53 }
 0x128   : > { %v1952_v63 = vrot.slane %v1827_v33, 2  ;;  %v373_v55 = vmul.f32 %v3552_v24, %v2490_v11  ;;  %v499_v58 = vrot.slane %v372_v21, 1  ;;  %v617_v3 = vmul.f32 %v3549_v8, %v2492_v12 }
 0x129   : > { %v927_v13 = vadd.f32 %v895_v28, %v810_v51  ;;  %v2019_v45 = vadd.f32 %v1951_v52, %v1775_v36  ;;  %v321_v9 = vadd.f32 %v3582_v48, %v289_v15  ;;  %v618_v42 = vmul.f32 %v3552_v24, %v2492_v12  ;;  %v2209_v15 = vld [vmem:[%s2497_s5 + $0x190] sm:$0x3] }
 0x12a   : > { %v979_v23 = vmul.f32 %v3632_v61, %v2499_v14  ;;  %v500_v22 = vrot.slane %v373_v55, 1  ;;  %v744_v57 = vrot.slane %v617_v3, 2  ;;  %v980_v35 = vmul.f32 %v3635_v32, %v2499_v14 }
 0x12b   : > { %v1171_v16 = vadd.f32 %v1104_v40, %v927_v13  ;;  %2051 = vst [vmem:[%s2619_s18 + $0xe0] sm:$0xff] %v2019_v45  ;;  %v1709_v17 = vsel %vm423_vm0, %v1706_v5, %v1708_v41  ;;  %v745_v59 = vrot.slane %v618_v42, 2  ;;  %v1223_v8 = vmul.f32 %v3632_v61, %v2510_v19  ;;  %v2257_v13 = vld [vmem:[%s2497_s5 + $0x1a8] sm:$0x3]  ;;  %s2072_s5 = sshll.u32 %s2619_s18, 4  ;;  %s3746_s5 = int_to_ptr.vmem [resolvable:$true] %s2072_s5 }
 0x12c   : > { %v1224_v7 = vmul.f32 %v3635_v32, %v2510_v19  ;;  %v501_v6 = vsel %vm423_vm0, %v499_v58, %v500_v22  ;;  %v1105_v49 = vrot.slane %v979_v23, 1  ;;  %v1106_v25 = vrot.slane %v980_v35, 1  ;;  %s2327_s15 = scalar_lea.vmem %s3746_s5, 4096  ;;  %p2334_p1 = scmp.lt.s32.totalorder %s3746_s5, %s2332_s19 }
 0x12d   : > { %v1415_v4 = vadd.f32 %v1348_v56, %v1171_v16  ;;  %v566_v46 = vadd.f32 %v501_v6, %v321_v9  ;;  %v746_v1 = vsel %vm668_vm1, %v744_v57, %v745_v59  ;;  %v896_v5 = vmul.f32 %v3632_v61, %v2508_v18  ;;  %p2328_p12 = scmp.ne.s32.totalorder %s3746_s5, %s2327_s15  ;;  %p2335_p2 = scmp.lt.s32.totalorder %s2333_s21, %s2327_s15 }
 0x12e   : > { %v1349_v37 = vrot.slane %v1223_v8, 2  ;;  %v1350_v50 = vrot.slane %v1224_v7, 2  ;;  %v1584_v28 = vmul.f32 %v2255_v62, %v2512_v20  ;;  %v1585_v38 = vmul.f32 %v2256_v2, %v2512_v20 }
 0x12f   : > { %v1532_v54 = vadd.f32 %v1500_v60, %v1415_v4  ;;  %v1953_v43 = vsel %vm668_vm1, %v1950_v26, %v1952_v63  ;;  %v811_v29 = vadd.f32 %v746_v1, %v566_v46  ;;  %v1828_v0 = vmul.f32 %v3564_v39, %v2255_v62  ;;  %p2329_p13 = pnand %p2328_p12, %p2468_p4  ;;  %p2336_p3 = por %p2335_p2, %p2334_p1 }
 0x130   : > { %v1107_v31 = vsel %vm423_vm0, %v1105_v49, %v1106_v25  ;;  %v1829_v61 = vmul.f32 %v3564_v39, %v2256_v2  ;;  %v290_v44 = vmul.f32 %v3552_v24, %v2488_v10  ;;  %v1710_v53 = vrot.slane %v1584_v28, 1 }
 0x131   : > { %v1776_v33 = vadd.f32 %v1709_v17, %v1532_v54  ;;  %v928_v47 = vadd.f32 %v896_v5, %v811_v29  ;;  %v1711_v34 = vrot.slane %v1585_v38, 1  ;;  %v374_v52 = vmul.f32 %v2490_v11, %v254_v27  ;;  %p2330_p0 = pneg %p2329_p13 }
 0x132   : > { %v1351_v51 = vsel %vm668_vm1, %v1349_v37, %v1350_v50  ;;  %v322_v60 = vadd.f32 %v3582_v48, %v290_v44  ;;  %v619_v41 = vmul.f32 %v2492_v12, %v254_v27  ;;  %v1501_v36 = vmul.f32 %v2255_v62, %v2531_v30 }
 0x133   : > { %v2020_v26 = vadd.f32 %v1953_v43, %v1776_v33  ;;  %v1172_v21 = vadd.f32 %v1107_v31, %v928_v47  ;;  %v1954_v40 = vrot.slane %v1828_v0, 2  ;;  %v502_v56 = vrot.slane %v374_v52, 1  ;;  %p2337_p5 = pnand %p2336_p3, %p2330_p0 }
 0x134   : > { %v1955_v10 = vrot.slane %v1829_v61, 2  ;;  %v747_v24 = vrot.slane %v619_v41, 2  ;;  %v981_v63 = vmul.f32 %v2209_v15, %v2499_v14  ;;  %v1225_v11 = vmul.f32 %v2209_v15, %v2510_v19 }
 0x135   : > { %2052 = vst [vmem:[%s2619_s18 + $0xe8] sm:$0xff] %v2020_v26  ;;  %v1416_v55 = vadd.f32 %v1351_v51, %v1172_v21  ;;  %v1712_v58 = vsel %vm423_vm0, %v1710_v53, %v1711_v34  ;;  %v503_v48 = vsel %vm423_vm0, %v500_v22, %v502_v56  ;;  %v897_v45 = vmul.f32 %v3635_v32, %v2508_v18 }
 0x136   : > { %v567_v3 = vadd.f32 %v503_v48, %v322_v60  ;;  %v748_v12 = vsel %vm668_vm1, %v745_v59, %v747_v24  ;;  %v1108_v9 = vrot.slane %v981_v63, 1  ;;  %v1352_v23 = vrot.slane %v1225_v11, 2 }
 0x137   : > { %v1533_v42 = vadd.f32 %v1501_v36, %v1416_v55  ;;  %v1586_v14 = vmul.f32 %v2257_v13, %v2512_v20  ;;  %v1956_v19 = vsel %vm668_vm1, %v1954_v40, %v1955_v10  ;;  %v1830_v35 = vmul.f32 %v3564_v39, %v2257_v13 }
 0x138   : > { %v812_v16 = vadd.f32 %v748_v12, %v567_v3  ;;  %v1109_v22 = vsel %vm423_vm0, %v1106_v25, %v1108_v9  ;;  %v1353_v18 = vsel %vm668_vm1, %v1350_v50, %v1352_v23  ;;  %v1502_v20 = vmul.f32 %v2256_v2, %v2531_v30 }
 0x139   : > { %v1777_v57 = vadd.f32 %v1712_v58, %v1533_v42  ;;  %v1713_v32 = vrot.slane %v1586_v14, 1  ;;  %v1957_v7 = vrot.slane %v1830_v35, 2 }
 0x13a   : > { %v929_v17 = vadd.f32 %v897_v45, %v812_v16 }
 0x13b   : > { %v2021_v59 = vadd.f32 %v1956_v19, %v1777_v57  ;;  %v1714_v4 = vsel %vm423_vm0, %v1711_v34, %v1713_v32  ;;  %v1958_v39 = vsel %vm668_vm1, %v1955_v10, %v1957_v7 }
 0x13c   : > { %v1173_v8 = vadd.f32 %v1109_v22, %v929_v17 }
 0x13d   : > { %2053 = vst [vmem:[%s2619_s18 + $0xf0] sm:$0xff] %v2021_v59 }
 0x13e   : > { %v1417_v62 = vadd.f32 %v1353_v18, %v1173_v8 }
 0x140   : > { %v1534_v6 = vadd.f32 %v1502_v20, %v1417_v62 }
 0x142   : > { %v1778_v49 = vadd.f32 %v1714_v4, %v1534_v6 }
 0x144   : > { %v2022_v30 = vadd.f32 %v1958_v39, %v1778_v49 }
 0x146   : > { %2054 = vst [vmem:[%s2619_s18 + $0xf8] sm:$0xff] %v2022_v30 }
 0x147   : > { %2340 = shalt.err (!%p2337_p5)
}
 0x148   : > { %s2341_s10 = scalar_lea.hbm %s3744_s8, 4096  ;;  %s2345_s26 = scalar_lea.hbm %s3799_s3, 8192 }
 0x149   : > { %p2342_p6 = scmp.ne.s32.totalorder %s3744_s8, %s2341_s10  ;;  %p2346_p10 = scmp.lt.s32.totalorder %s3744_s8, %s3799_s3 }
 0x14a   : > { %p2347_p11 = scmp.lt.s32.totalorder %s2345_s26, %s2341_s10 }
 0x14b   : > { %p2343_p7 = pnand %p2342_p6, %p2468_p4 }
 0x14c   : > { %p2348_p12 = por %p2347_p11, %p2346_p10 }
 0x14d   : > { %p2344_p9 = pneg %p2343_p7 }
 0x14f   : > { %p2349_p13 = pnand %p2348_p12, %p2344_p9 }
 0x151   : > { %2352 = shalt.err (!%p2349_p13)
}
 0x152   : > { %s2406_s29 = smov 128   ;;  %s2407_s30 = smov 8  }
 0x153   : > { %2266 = dma.vmem_to_hbm [thread:$0]  (%p2468_p4), %s3746_s5, 4096, %s3744_s8, %s3751_s9, %s2406_s29, %s2406_s29, %s2407_s30  }
 0x154 PF: > { %p2272_p0 = scmp.ge.s32.totalorder %s2403_s17, 2  ;;  %s2087_s4 = sand.u32 1, %s2383_s12  }
 0x155   : > { %s2088_s6 = scalar_lea.sflag [#allocation3], %s2087_s4 }
 0x156   : > { %p2269_p1 = pnand %p2272_p0, %p2475_p8 }
 0x158   : > { %p2270_p2 = pneg %p2269_p1 }
 0x15a   : > { %2378 = dma.done.wait (%p2270_p2), %s2088_s6, 4096  }
 0x15b   : > { %2380 = vsyncadd (%p2270_p2), %s2088_s6, 4294963200  ;;  %s16_s17 = sadd.s32 1, %s2403_s17   ;;  %s3802_s12 = smov %s2387_s13 }
 0x15c   : > { %p13_p3 = scmp.ge.s32.totalorder %s16_s17, 4   ;;  %s3803_s13 = smov %s2391_s14 }
 0x15d   : > { %s3804_s14 = smov %s2481_s25  ;;  %s3805_s15 = smov %s2399_s16 }
 0x15e   : > { %s3806_s16 = smov %s3808_s20  ;;  %15 = sbr.rel (!%p13_p3) target bundleno = 4 (0x4), region = 69 }
 0x163   :  { %2093 = vsyncpa [#allocation3], 1 }
 0x164   :  { %2095 = vsyncpa [#allocation3 + $0x1], 1 }

</bundles_post_ra>
